<compile_context>
chip_gen: v7x
topology: tpu7x:2x2x1
jax: 0.10.0
libtpu: 0.0.40
codegen_flags: <defaults>
</compile_context>

<pallas_src>
import functools

import jax
import jax.numpy as jnp
from jax import lax
from jax.experimental import pallas as pl
from jax.experimental.pallas import tpu as pltpu

EPS = 1e-5


def residual_block_kernel(x_ref, w1_ref, w2_ref, scal_ref, gm_ref, mask_ref,
                          out_ref, *, H, W, num_groups, b_tile):
    # Block shapes (one grid step = b_tile samples), channels = rows, pixels = lanes:
    #   x_ref    : (b_tile, Cin, H*W) f32
    #   w1_ref   : (P, 9*Cin) bf16   packed conv1 weights, K = (kh*3+kw)*Cin + c
    #   w2_ref   : (P, 9*P)   bf16   packed conv2 weights
    #   scal_ref : (P, 8)     f32    [b1, g1, be1, b2, g2, be2, 0, 0]
    #   gm_ref   : (P, P)     f32    group-membership matrix (1.0 if same group)
    #   mask_ref : (8, H*W)   f32    boundary masks for the 8 non-center taps
    #   out_ref  : (b_tile, P, H*W) f32
    HW = H * W
    P = out_ref.shape[1]
    cg = P // num_groups
    inv_count = 1.0 / (HW * cg)

    gm = gm_ref[...]                                           # (P, P) f32
    b1, g1, be1 = scal_ref[:, 0:1], scal_ref[:, 1:2], scal_ref[:, 2:3]
    b2, g2, be2 = scal_ref[:, 3:4], scal_ref[:, 4:5], scal_ref[:, 5:6]

    def im2col(a):
        # a: (cin, HW) f32 -> (9*cin, HW) bf16 im2col operand.  Each off-center
        # tap is a static lane roll (XLU) masked at the image boundary with a
        # precomputed 0/1 mask row (handles padding=1 and wrap-around).
        cin = a.shape[0]
        per_tap_bf16 = (cin % 16 == 0)       # sublane-aligned bf16 concat
        taps, mi = [], 0
        for dh in range(3):
            for dw in range(3):
                if dh == 1 and dw == 1:
                    t = a
                else:
                    s = (dh - 1) * W + (dw - 1)        # flat-pixel source shift
                    t = pltpu.roll(a, shift=(-s) % HW, axis=1)
                    t = t * mask_ref[mi:mi + 1, :]
                    mi += 1
                taps.append(t.astype(jnp.bfloat16) if per_tap_bf16 else t)
        x9 = jnp.concatenate(taps, axis=0)                      # (9*cin, HW)
        return x9 if per_tap_bf16 else x9.astype(jnp.bfloat16)

    def conv3x3(acts, w_ref, bias):
        # acts: list of b_tile (cin, HW) f32 arrays.  One MXU matmul per conv:
        # (P, 9*cin) x (9*cin, b_tile*HW) -> (P, b_tile*HW), f32 accumulation.
        cols = [im2col(a) for a in acts]
        x9 = cols[0] if len(cols) == 1 else jnp.concatenate(cols, axis=1)
        y = jnp.dot(w_ref[...], x9, preferred_element_type=jnp.float32)
        return y + bias                                         # (P, b_tile*HW)

    def gn_relu(y, gamma, beta):
        # GroupNorm over (channels-in-group, all pixels) for ONE sample + ReLU.
        # Lane-reduce first (f32 on VPU/XLU), then a tiny membership dot.
        s1 = jnp.sum(y, axis=1, keepdims=True)                  # (P, 1)
        s2 = jnp.sum(y * y, axis=1, keepdims=True)              # (P, 1)
        mean = jnp.dot(gm, s1, preferred_element_type=jnp.float32) * inv_count
        ex2 = jnp.dot(gm, s2, preferred_element_type=jnp.float32) * inv_count
        var = ex2 - mean * mean
        yn = (y - mean) * lax.rsqrt(var + EPS)
        return jnp.maximum(yn * gamma + beta, 0.0)

    xs = [x_ref[b] for b in range(b_tile)]                      # b_tile x (Cin, HW)
    y1 = conv3x3(xs, w1_ref, b1)                                # (P, b_tile*HW)
    y1s = [gn_relu(y1[:, b * HW:(b + 1) * HW], g1, be1) for b in range(b_tile)]
    y2 = conv3x3(y1s, w2_ref, b2)                               # (P, b_tile*HW)
    for b in range(b_tile):
        y2b = gn_relu(y2[:, b * HW:(b + 1) * HW], g2, be2)
        out_ref[b] = jnp.maximum(x_ref[b] + y2b, 0.0)           # residual + ReLU


def residual_block(x_nchw, params, *, num_groups, b_tile=None):
    """ResidualBlock forward (norm_fn='group', stride=1).  NCHW in, NCHW out."""
    w1, b1, g1, be1, w2, b2, g2, be2 = params                   # conv weights HWIO
    N, Cin, H, W = x_nchw.shape
    P = w1.shape[-1]
    HW = H * W
    assert Cin == P, "stride=1 residual add requires in_planes == planes"
    assert P % num_groups == 0
    if b_tile is None:
        b_tile = max(d for d in (8, 4, 2, 1) if N % d == 0)
    assert N % b_tile == 0

    # Metadata-only reshape (no transpose / pad / copy): pixels -> lane dim.
    x = x_nchw.reshape(N, Cin, HW).astype(jnp.float32)

    # Pack conv weights HWIO (3,3,cin,P) -> (P, 9*cin); K index = (kh*3+kw)*cin + c.
    pack_w = lambda w: jnp.transpose(w, (3, 0, 1, 2)).reshape(P, -1).astype(jnp.bfloat16)

    # Pack the six per-channel scalars into a single lane-padded (P, 8) block.
    zeros = jnp.zeros((P,), jnp.float32)
    scal = jnp.stack([b1, g1, be1, b2, g2, be2, zeros, zeros],
                     axis=1).astype(jnp.float32)                # (P, 8)

    cgroup = P // num_groups
    gidx = jnp.arange(P) // cgroup
    gm = (gidx[:, None] == gidx[None, :]).astype(jnp.float32)   # (P, P)

    # Precompute the 8 boundary masks (one per non-center tap) once; constant
    # index_map keeps them resident in VMEM across grid steps.
    h_idx = jnp.arange(HW, dtype=jnp.int32) // W
    w_idx = jnp.arange(HW, dtype=jnp.int32) % W
    rows = []
    for dh in range(3):
        for dw in range(3):
            if dh == 1 and dw == 1:
                continue
            m = jnp.ones((HW,), jnp.float32)
            if dh == 0:
                m = m * (h_idx != 0)
            if dh == 2:
                m = m * (h_idx != H - 1)
            if dw == 0:
                m = m * (w_idx != 0)
            if dw == 2:
                m = m * (w_idx != W - 1)
            rows.append(m)
    masks = jnp.stack(rows, axis=0)                             # (8, HW)

    kernel = functools.partial(residual_block_kernel, H=H, W=W,
                               num_groups=num_groups, b_tile=b_tile)
    out = pl.pallas_call(
        kernel,
        out_shape=jax.ShapeDtypeStruct((N, P, HW), jnp.float32),
        grid_spec=pltpu.PrefetchScalarGridSpec(
            num_scalar_prefetch=0,
            grid=(N // b_tile,),
            in_specs=[
                pl.BlockSpec((b_tile, Cin, HW), lambda n: (n, 0, 0)),
                pl.BlockSpec((P, 9 * Cin), lambda n: (0, 0)),
                pl.BlockSpec((P, 9 * P), lambda n: (0, 0)),
                pl.BlockSpec((P, 8), lambda n: (0, 0)),
                pl.BlockSpec((P, P), lambda n: (0, 0)),
                pl.BlockSpec((8, HW), lambda n: (0, 0)),
            ],
            out_specs=pl.BlockSpec((b_tile, P, HW), lambda n: (n, 0, 0)),
        ),
        compiler_params=pltpu.CompilerParams(
            dimension_semantics=("parallel",)),
    )(x, pack_w(w1), pack_w(w2), scal, gm, masks)

    return out.reshape(N, P, H, W)                              # NCHW (metadata only)


# --------------------------- pure-JAX reference -------------------------------
def _ref_conv3x3(x_nchw, w_hwio, b):
    # Same mixed-precision policy as the kernel: bf16 operands, f32 accumulation.
    y = lax.conv_general_dilated(
        x_nchw.astype(jnp.bfloat16), w_hwio.astype(jnp.bfloat16),
        window_strides=(1, 1), padding="SAME",
        dimension_numbers=("NCHW", "HWIO", "NCHW"),
        preferred_element_type=jnp.float32)
    return y + b.reshape(1, -1, 1, 1)


def _ref_group_norm(y, gamma, beta, num_groups, eps=EPS):
    N, C, H, W = y.shape
    cg = C // num_groups
    yg = y.reshape(N, num_groups, cg, H, W)
    mean = yg.mean(axis=(2, 3, 4), keepdims=True)
    var = ((yg - mean) ** 2).mean(axis=(2, 3, 4), keepdims=True)
    yn = ((yg - mean) / jnp.sqrt(var + eps)).reshape(N, C, H, W)
    return yn * gamma.reshape(1, -1, 1, 1) + beta.reshape(1, -1, 1, 1)


def _ref_residual_block(x, params, *, num_groups):
    w1, b1, g1, be1, w2, b2, g2, be2 = params
    y = jnp.maximum(_ref_group_norm(_ref_conv3x3(x, w1, b1), g1, be1, num_groups), 0.0)
    y = jnp.maximum(_ref_group_norm(_ref_conv3x3(y, w2, b2), g2, be2, num_groups), 0.0)
    return jnp.maximum(x + y, 0.0)


if __name__ == "__main__":
    key = jax.random.PRNGKey(0)
    N, C, H, W = 2, 8, 16, 16          # in_planes = planes = 8 (stride=1 residual add)
    P = 8
    num_groups = P // 8                # as in the module: planes // 8

    ks = jax.random.split(key, 9)
    x = jax.random.normal(ks[0], (N, C, H, W), jnp.float32)

    w1 = 0.1 * jax.random.normal(ks[1], (3, 3, C, P), jnp.float32)   # HWIO
    b1 = 0.1 * jax.random.normal(ks[2], (P,), jnp.float32)
    g1 = 1.0 + 0.1 * jax.random.normal(ks[3], (P,), jnp.float32)
    be1 = 0.1 * jax.random.normal(ks[4], (P,), jnp.float32)
    w2 = 0.1 * jax.random.normal(ks[5], (3, 3, P, P), jnp.float32)   # HWIO
    b2 = 0.1 * jax.random.normal(ks[6], (P,), jnp.float32)
    g2 = 1.0 + 0.1 * jax.random.normal(ks[7], (P,), jnp.float32)
    be2 = 0.1 * jax.random.normal(ks[8], (P,), jnp.float32)
    params = (w1, b1, g1, be1, w2, b2, g2, be2)

    out = jax.block_until_ready(residual_block(x, params, num_groups=num_groups))
    ref = jax.block_until_ready(_ref_residual_block(x, params, num_groups=num_groups))

    assert out.shape == (N, P, H, W)
    diff = jnp.abs(out - ref)
    max_err = float(jnp.max(diff))
    mean_err = float(jnp.mean(diff))
    assert max_err < 2e-2 and mean_err < 2e-3, (
        f"mismatch vs reference: max={max_err}, mean={mean_err}")

    print("KERNEL_OK")
</pallas_src>

<mosaic_0001>
module attributes {stable_mosaic.version = 11 : i64} {
  func.func @residual_block_kernel(%arg0: i32, %arg1: memref<2x8x256xf32, #tpu.memory_space<vmem>>, %arg2: memref<8x72xbf16, #tpu.memory_space<vmem>>, %arg3: memref<8x72xbf16, #tpu.memory_space<vmem>>, %arg4: memref<8x8xf32, #tpu.memory_space<vmem>>, %arg5: memref<8x8xf32, #tpu.memory_space<vmem>>, %arg6: memref<8x256xf32, #tpu.memory_space<vmem>>, %arg7: memref<2x8x256xf32, #tpu.memory_space<vmem>>) attributes {dimension_semantics = [#tpu.dimension_semantics<parallel>], iteration_bounds = array<i64: 1>, scalar_prefetch = 0 : i64, scratch_operands = 0 : i64, tpu.core_type = #tpu.core_type<tc>, window_params = [{transform_indices = @transform_0, window_bounds = array<i64: 2, 8, 256>}, {pipeline_mode = #tpu.pipeline_mode<synchronous>, transform_indices = @transform_1, window_bounds = array<i64: 8, 72>}, {pipeline_mode = #tpu.pipeline_mode<synchronous>, transform_indices = @transform_2, window_bounds = array<i64: 8, 72>}, {pipeline_mode = #tpu.pipeline_mode<synchronous>, transform_indices = @transform_3, window_bounds = array<i64: 8, 8>}, {pipeline_mode = #tpu.pipeline_mode<synchronous>, transform_indices = @transform_4, window_bounds = array<i64: 8, 8>}, {pipeline_mode = #tpu.pipeline_mode<synchronous>, transform_indices = @transform_5, window_bounds = array<i64: 8, 256>}, {transform_indices = @transform_6, window_bounds = array<i64: 2, 8, 256>}]} {
    %c0 = arith.constant 0 : index
    %c0_0 = arith.constant 0 : index
    %0 = vector.load %arg5[%c0, %c0_0] : memref<8x8xf32, #tpu.memory_space<vmem>>, vector<8x8xf32>
    %c0_1 = arith.constant 0 : index
    %c0_2 = arith.constant 0 : index
    %1 = vector.load %arg4[%c0_1, %c0_2] : memref<8x8xf32, #tpu.memory_space<vmem>>, vector<8x1xf32>
    %c0_3 = arith.constant 0 : index
    %c1 = arith.constant 1 : index
    %2 = vector.load %arg4[%c0_3, %c1] : memref<8x8xf32, #tpu.memory_space<vmem>>, vector<8x1xf32>
    %c0_4 = arith.constant 0 : index
    %c2 = arith.constant 2 : index
    %3 = vector.load %arg4[%c0_4, %c2] : memref<8x8xf32, #tpu.memory_space<vmem>>, vector<8x1xf32>
    %c0_5 = arith.constant 0 : index
    %c3 = arith.constant 3 : index
    %4 = vector.load %arg4[%c0_5, %c3] : memref<8x8xf32, #tpu.memory_space<vmem>>, vector<8x1xf32>
    %c0_6 = arith.constant 0 : index
    %c4 = arith.constant 4 : index
    %5 = vector.load %arg4[%c0_6, %c4] : memref<8x8xf32, #tpu.memory_space<vmem>>, vector<8x1xf32>
    %c0_7 = arith.constant 0 : index
    %c5 = arith.constant 5 : index
    %6 = vector.load %arg4[%c0_7, %c5] : memref<8x8xf32, #tpu.memory_space<vmem>>, vector<8x1xf32>
    %c0_8 = arith.constant 0 : index
    %c0_9 = arith.constant 0 : index
    %c0_10 = arith.constant 0 : index
    %7 = vector.load %arg1[%c0_8, %c0_9, %c0_10] : memref<2x8x256xf32, #tpu.memory_space<vmem>>, vector<1x8x256xf32>
    %8 = vector.shape_cast %7 : vector<1x8x256xf32> to vector<8x256xf32>
    %c1_11 = arith.constant 1 : index
    %c0_12 = arith.constant 0 : index
    %c0_13 = arith.constant 0 : index
    %9 = vector.load %arg1[%c1_11, %c0_12, %c0_13] : memref<2x8x256xf32, #tpu.memory_space<vmem>>, vector<1x8x256xf32>
    %10 = vector.shape_cast %9 : vector<1x8x256xf32> to vector<8x256xf32>
    %c17_i32 = arith.constant 17 : i32
    %11 = tpu.dynamic_rotate %8 by %c17_i32 dim 1 : vector<8x256xf32>, i32 -> vector<8x256xf32>
    %c0_14 = arith.constant 0 : index
    %c0_15 = arith.constant 0 : index
    %12 = vector.load %arg6[%c0_14, %c0_15] : memref<8x256xf32, #tpu.memory_space<vmem>>, vector<1x256xf32>
    %13 = vector.broadcast %12 : vector<1x256xf32> to vector<8x256xf32>
    %14 = arith.mulf %11, %13 : vector<8x256xf32>
    %c16_i32 = arith.constant 16 : i32
    %15 = tpu.dynamic_rotate %8 by %c16_i32 dim 1 : vector<8x256xf32>, i32 -> vector<8x256xf32>
    %c1_16 = arith.constant 1 : index
    %c0_17 = arith.constant 0 : index
    %16 = vector.load %arg6[%c1_16, %c0_17] : memref<8x256xf32, #tpu.memory_space<vmem>>, vector<1x256xf32>
    %17 = vector.broadcast %16 : vector<1x256xf32> to vector<8x256xf32>
    %18 = arith.mulf %15, %17 : vector<8x256xf32>
    %c15_i32 = arith.constant 15 : i32
    %19 = tpu.dynamic_rotate %8 by %c15_i32 dim 1 : vector<8x256xf32>, i32 -> vector<8x256xf32>
    %c2_18 = arith.constant 2 : index
    %c0_19 = arith.constant 0 : index
    %20 = vector.load %arg6[%c2_18, %c0_19] : memref<8x256xf32, #tpu.memory_space<vmem>>, vector<1x256xf32>
    %21 = vector.broadcast %20 : vector<1x256xf32> to vector<8x256xf32>
    %22 = arith.mulf %19, %21 : vector<8x256xf32>
    %c1_i32 = arith.constant 1 : i32
    %23 = tpu.dynamic_rotate %8 by %c1_i32 dim 1 : vector<8x256xf32>, i32 -> vector<8x256xf32>
    %c3_20 = arith.constant 3 : index
    %c0_21 = arith.constant 0 : index
    %24 = vector.load %arg6[%c3_20, %c0_21] : memref<8x256xf32, #tpu.memory_space<vmem>>, vector<1x256xf32>
    %25 = vector.broadcast %24 : vector<1x256xf32> to vector<8x256xf32>
    %26 = arith.mulf %23, %25 : vector<8x256xf32>
    %c255_i32 = arith.constant 255 : i32
    %27 = tpu.dynamic_rotate %8 by %c255_i32 dim 1 : vector<8x256xf32>, i32 -> vector<8x256xf32>
    %c4_22 = arith.constant 4 : index
    %c0_23 = arith.constant 0 : index
    %28 = vector.load %arg6[%c4_22, %c0_23] : memref<8x256xf32, #tpu.memory_space<vmem>>, vector<1x256xf32>
    %29 = vector.broadcast %28 : vector<1x256xf32> to vector<8x256xf32>
    %30 = arith.mulf %27, %29 : vector<8x256xf32>
    %c241_i32 = arith.constant 241 : i32
    %31 = tpu.dynamic_rotate %8 by %c241_i32 dim 1 : vector<8x256xf32>, i32 -> vector<8x256xf32>
    %c5_24 = arith.constant 5 : index
    %c0_25 = arith.constant 0 : index
    %32 = vector.load %arg6[%c5_24, %c0_25] : memref<8x256xf32, #tpu.memory_space<vmem>>, vector<1x256xf32>
    %33 = vector.broadcast %32 : vector<1x256xf32> to vector<8x256xf32>
    %34 = arith.mulf %31, %33 : vector<8x256xf32>
    %c240_i32 = arith.constant 240 : i32
    %35 = tpu.dynamic_rotate %8 by %c240_i32 dim 1 : vector<8x256xf32>, i32 -> vector<8x256xf32>
    %c6 = arith.constant 6 : index
    %c0_26 = arith.constant 0 : index
    %36 = vector.load %arg6[%c6, %c0_26] : memref<8x256xf32, #tpu.memory_space<vmem>>, vector<1x256xf32>
    %37 = vector.broadcast %36 : vector<1x256xf32> to vector<8x256xf32>
    %38 = arith.mulf %35, %37 : vector<8x256xf32>
    %c239_i32 = arith.constant 239 : i32
    %39 = tpu.dynamic_rotate %8 by %c239_i32 dim 1 : vector<8x256xf32>, i32 -> vector<8x256xf32>
    %c7 = arith.constant 7 : index
    %c0_27 = arith.constant 0 : index
    %40 = vector.load %arg6[%c7, %c0_27] : memref<8x256xf32, #tpu.memory_space<vmem>>, vector<1x256xf32>
    %41 = vector.broadcast %40 : vector<1x256xf32> to vector<8x256xf32>
    %42 = arith.mulf %39, %41 : vector<8x256xf32>
    %43 = tpu.concatenate %14, %18, %22, %26, %8, %30, %34, %38, %42 in 0 : vector<8x256xf32>, vector<8x256xf32>, vector<8x256xf32>, vector<8x256xf32>, vector<8x256xf32>, vector<8x256xf32>, vector<8x256xf32>, vector<8x256xf32>, vector<8x256xf32> -> vector<72x256xf32>
    %44 = arith.truncf %43 : vector<72x256xf32> to vector<72x256xbf16>
    %c17_i32_28 = arith.constant 17 : i32
    %45 = tpu.dynamic_rotate %10 by %c17_i32_28 dim 1 : vector<8x256xf32>, i32 -> vector<8x256xf32>
    %c0_29 = arith.constant 0 : index
    %c0_30 = arith.constant 0 : index
    %46 = vector.load %arg6[%c0_29, %c0_30] : memref<8x256xf32, #tpu.memory_space<vmem>>, vector<1x256xf32>
    %47 = vector.broadcast %46 : vector<1x256xf32> to vector<8x256xf32>
    %48 = arith.mulf %45, %47 : vector<8x256xf32>
    %c16_i32_31 = arith.constant 16 : i32
    %49 = tpu.dynamic_rotate %10 by %c16_i32_31 dim 1 : vector<8x256xf32>, i32 -> vector<8x256xf32>
    %c1_32 = arith.constant 1 : index
    %c0_33 = arith.constant 0 : index
    %50 = vector.load %arg6[%c1_32, %c0_33] : memref<8x256xf32, #tpu.memory_space<vmem>>, vector<1x256xf32>
    %51 = vector.broadcast %50 : vector<1x256xf32> to vector<8x256xf32>
    %52 = arith.mulf %49, %51 : vector<8x256xf32>
    %c15_i32_34 = arith.constant 15 : i32
    %53 = tpu.dynamic_rotate %10 by %c15_i32_34 dim 1 : vector<8x256xf32>, i32 -> vector<8x256xf32>
    %c2_35 = arith.constant 2 : index
    %c0_36 = arith.constant 0 : index
    %54 = vector.load %arg6[%c2_35, %c0_36] : memref<8x256xf32, #tpu.memory_space<vmem>>, vector<1x256xf32>
    %55 = vector.broadcast %54 : vector<1x256xf32> to vector<8x256xf32>
    %56 = arith.mulf %53, %55 : vector<8x256xf32>
    %c1_i32_37 = arith.constant 1 : i32
    %57 = tpu.dynamic_rotate %10 by %c1_i32_37 dim 1 : vector<8x256xf32>, i32 -> vector<8x256xf32>
    %c3_38 = arith.constant 3 : index
    %c0_39 = arith.constant 0 : index
    %58 = vector.load %arg6[%c3_38, %c0_39] : memref<8x256xf32, #tpu.memory_space<vmem>>, vector<1x256xf32>
    %59 = vector.broadcast %58 : vector<1x256xf32> to vector<8x256xf32>
    %60 = arith.mulf %57, %59 : vector<8x256xf32>
    %c255_i32_40 = arith.constant 255 : i32
    %61 = tpu.dynamic_rotate %10 by %c255_i32_40 dim 1 : vector<8x256xf32>, i32 -> vector<8x256xf32>
    %c4_41 = arith.constant 4 : index
    %c0_42 = arith.constant 0 : index
    %62 = vector.load %arg6[%c4_41, %c0_42] : memref<8x256xf32, #tpu.memory_space<vmem>>, vector<1x256xf32>
    %63 = vector.broadcast %62 : vector<1x256xf32> to vector<8x256xf32>
    %64 = arith.mulf %61, %63 : vector<8x256xf32>
    %c241_i32_43 = arith.constant 241 : i32
    %65 = tpu.dynamic_rotate %10 by %c241_i32_43 dim 1 : vector<8x256xf32>, i32 -> vector<8x256xf32>
    %c5_44 = arith.constant 5 : index
    %c0_45 = arith.constant 0 : index
    %66 = vector.load %arg6[%c5_44, %c0_45] : memref<8x256xf32, #tpu.memory_space<vmem>>, vector<1x256xf32>
    %67 = vector.broadcast %66 : vector<1x256xf32> to vector<8x256xf32>
    %68 = arith.mulf %65, %67 : vector<8x256xf32>
    %c240_i32_46 = arith.constant 240 : i32
    %69 = tpu.dynamic_rotate %10 by %c240_i32_46 dim 1 : vector<8x256xf32>, i32 -> vector<8x256xf32>
    %c6_47 = arith.constant 6 : index
    %c0_48 = arith.constant 0 : index
    %70 = vector.load %arg6[%c6_47, %c0_48] : memref<8x256xf32, #tpu.memory_space<vmem>>, vector<1x256xf32>
    %71 = vector.broadcast %70 : vector<1x256xf32> to vector<8x256xf32>
    %72 = arith.mulf %69, %71 : vector<8x256xf32>
    %c239_i32_49 = arith.constant 239 : i32
    %73 = tpu.dynamic_rotate %10 by %c239_i32_49 dim 1 : vector<8x256xf32>, i32 -> vector<8x256xf32>
    %c7_50 = arith.constant 7 : index
    %c0_51 = arith.constant 0 : index
    %74 = vector.load %arg6[%c7_50, %c0_51] : memref<8x256xf32, #tpu.memory_space<vmem>>, vector<1x256xf32>
    %75 = vector.broadcast %74 : vector<1x256xf32> to vector<8x256xf32>
    %76 = arith.mulf %73, %75 : vector<8x256xf32>
    %77 = tpu.concatenate %48, %52, %56, %60, %10, %64, %68, %72, %76 in 0 : vector<8x256xf32>, vector<8x256xf32>, vector<8x256xf32>, vector<8x256xf32>, vector<8x256xf32>, vector<8x256xf32>, vector<8x256xf32>, vector<8x256xf32>, vector<8x256xf32> -> vector<72x256xf32>
    %78 = arith.truncf %77 : vector<72x256xf32> to vector<72x256xbf16>
    %79 = tpu.concatenate %44, %78 in 1 : vector<72x256xbf16>, vector<72x256xbf16> -> vector<72x512xbf16>
    %c0_52 = arith.constant 0 : index
    %c0_53 = arith.constant 0 : index
    %80 = vector.load %arg2[%c0_52, %c0_53] : memref<8x72xbf16, #tpu.memory_space<vmem>>, vector<8x72xbf16>
    %cst = arith.constant dense<0.000000e+00> : vector<8x512xf32>
    %81 = tpu.matmul %80, %79, %cst {dimension_numbers = #tpu.dot_dimension_numbers<[1], [0], [0], [1], [0, 0, 1, 1], [], []>} : vector<8x72xbf16>, vector<72x512xbf16>, vector<8x512xf32> -> vector<8x512xf32>
    %82 = vector.broadcast %1 : vector<8x1xf32> to vector<8x512xf32>
    %83 = arith.addf %81, %82 : vector<8x512xf32>
    %84 = vector.extract_strided_slice %83 {offsets = [0, 0], sizes = [8, 256], strides = [1, 1]} : vector<8x512xf32> to vector<8x256xf32>
    %cst_54 = arith.constant dense<0.000000e+00> : vector<8xf32>
    %85 = vector.multi_reduction <add>, %84, %cst_54 [1] : vector<8x256xf32> to vector<8xf32>
    %86 = vector.shape_cast %85 : vector<8xf32> to vector<8x1xf32>
    %87 = arith.mulf %84, %84 : vector<8x256xf32>
    %cst_55 = arith.constant dense<0.000000e+00> : vector<8xf32>
    %88 = vector.multi_reduction <add>, %87, %cst_55 [1] : vector<8x256xf32> to vector<8xf32>
    %89 = vector.shape_cast %88 : vector<8xf32> to vector<8x1xf32>
    %cst_56 = arith.constant dense<0.000000e+00> : vector<8x1xf32>
    %90 = tpu.matmul %0, %86, %cst_56 {dimension_numbers = #tpu.dot_dimension_numbers<[1], [0], [0], [1], [0, 0, 1, 1], [], []>} : vector<8x8xf32>, vector<8x1xf32>, vector<8x1xf32> -> vector<8x1xf32>
    %cst_57 = arith.constant 4.8828125E-4 : f32
    %91 = vector.broadcast %cst_57 : f32 to vector<8x1xf32>
    %92 = arith.mulf %90, %91 : vector<8x1xf32>
    %cst_58 = arith.constant dense<0.000000e+00> : vector<8x1xf32>
    %93 = tpu.matmul %0, %89, %cst_58 {dimension_numbers = #tpu.dot_dimension_numbers<[1], [0], [0], [1], [0, 0, 1, 1], [], []>} : vector<8x8xf32>, vector<8x1xf32>, vector<8x1xf32> -> vector<8x1xf32>
    %cst_59 = arith.constant 4.8828125E-4 : f32
    %94 = vector.broadcast %cst_59 : f32 to vector<8x1xf32>
    %95 = arith.mulf %93, %94 : vector<8x1xf32>
    %96 = arith.mulf %92, %92 : vector<8x1xf32>
    %97 = arith.subf %95, %96 : vector<8x1xf32>
    %98 = vector.broadcast %92 : vector<8x1xf32> to vector<8x256xf32>
    %99 = arith.subf %84, %98 : vector<8x256xf32>
    %cst_60 = arith.constant 9.99999974E-6 : f32
    %100 = vector.broadcast %cst_60 : f32 to vector<8x1xf32>
    %101 = arith.addf %97, %100 : vector<8x1xf32>
    %102 = math.rsqrt %101 : vector<8x1xf32>
    %103 = vector.broadcast %102 : vector<8x1xf32> to vector<8x256xf32>
    %104 = arith.mulf %99, %103 : vector<8x256xf32>
    %105 = vector.broadcast %2 : vector<8x1xf32> to vector<8x256xf32>
    %106 = arith.mulf %104, %105 : vector<8x256xf32>
    %107 = vector.broadcast %3 : vector<8x1xf32> to vector<8x256xf32>
    %108 = arith.addf %106, %107 : vector<8x256xf32>
    %cst_61 = arith.constant 0.000000e+00 : f32
    %109 = vector.broadcast %cst_61 : f32 to vector<8x256xf32>
    %110 = arith.maximumf %108, %109 : vector<8x256xf32>
    %111 = vector.extract_strided_slice %83 {offsets = [0, 256], sizes = [8, 256], strides = [1, 1]} : vector<8x512xf32> to vector<8x256xf32>
    %cst_62 = arith.constant dense<0.000000e+00> : vector<8xf32>
    %112 = vector.multi_reduction <add>, %111, %cst_62 [1] : vector<8x256xf32> to vector<8xf32>
    %113 = vector.shape_cast %112 : vector<8xf32> to vector<8x1xf32>
    %114 = arith.mulf %111, %111 : vector<8x256xf32>
    %cst_63 = arith.constant dense<0.000000e+00> : vector<8xf32>
    %115 = vector.multi_reduction <add>, %114, %cst_63 [1] : vector<8x256xf32> to vector<8xf32>
    %116 = vector.shape_cast %115 : vector<8xf32> to vector<8x1xf32>
    %cst_64 = arith.constant dense<0.000000e+00> : vector<8x1xf32>
    %117 = tpu.matmul %0, %113, %cst_64 {dimension_numbers = #tpu.dot_dimension_numbers<[1], [0], [0], [1], [0, 0, 1, 1], [], []>} : vector<8x8xf32>, vector<8x1xf32>, vector<8x1xf32> -> vector<8x1xf32>
    %cst_65 = arith.constant 4.8828125E-4 : f32
    %118 = vector.broadcast %cst_65 : f32 to vector<8x1xf32>
    %119 = arith.mulf %117, %118 : vector<8x1xf32>
    %cst_66 = arith.constant dense<0.000000e+00> : vector<8x1xf32>
    %120 = tpu.matmul %0, %116, %cst_66 {dimension_numbers = #tpu.dot_dimension_numbers<[1], [0], [0], [1], [0, 0, 1, 1], [], []>} : vector<8x8xf32>, vector<8x1xf32>, vector<8x1xf32> -> vector<8x1xf32>
    %cst_67 = arith.constant 4.8828125E-4 : f32
    %121 = vector.broadcast %cst_67 : f32 to vector<8x1xf32>
    %122 = arith.mulf %120, %121 : vector<8x1xf32>
    %123 = arith.mulf %119, %119 : vector<8x1xf32>
    %124 = arith.subf %122, %123 : vector<8x1xf32>
    %125 = vector.broadcast %119 : vector<8x1xf32> to vector<8x256xf32>
    %126 = arith.subf %111, %125 : vector<8x256xf32>
    %cst_68 = arith.constant 9.99999974E-6 : f32
    %127 = vector.broadcast %cst_68 : f32 to vector<8x1xf32>
    %128 = arith.addf %124, %127 : vector<8x1xf32>
    %129 = math.rsqrt %128 : vector<8x1xf32>
    %130 = vector.broadcast %129 : vector<8x1xf32> to vector<8x256xf32>
    %131 = arith.mulf %126, %130 : vector<8x256xf32>
    %132 = vector.broadcast %2 : vector<8x1xf32> to vector<8x256xf32>
    %133 = arith.mulf %131, %132 : vector<8x256xf32>
    %134 = vector.broadcast %3 : vector<8x1xf32> to vector<8x256xf32>
    %135 = arith.addf %133, %134 : vector<8x256xf32>
    %cst_69 = arith.constant 0.000000e+00 : f32
    %136 = vector.broadcast %cst_69 : f32 to vector<8x256xf32>
    %137 = arith.maximumf %135, %136 : vector<8x256xf32>
    %c17_i32_70 = arith.constant 17 : i32
    %138 = tpu.dynamic_rotate %110 by %c17_i32_70 dim 1 : vector<8x256xf32>, i32 -> vector<8x256xf32>
    %c0_71 = arith.constant 0 : index
    %c0_72 = arith.constant 0 : index
    %139 = vector.load %arg6[%c0_71, %c0_72] : memref<8x256xf32, #tpu.memory_space<vmem>>, vector<1x256xf32>
    %140 = vector.broadcast %139 : vector<1x256xf32> to vector<8x256xf32>
    %141 = arith.mulf %138, %140 : vector<8x256xf32>
    %c16_i32_73 = arith.constant 16 : i32
    %142 = tpu.dynamic_rotate %110 by %c16_i32_73 dim 1 : vector<8x256xf32>, i32 -> vector<8x256xf32>
    %c1_74 = arith.constant 1 : index
    %c0_75 = arith.constant 0 : index
    %143 = vector.load %arg6[%c1_74, %c0_75] : memref<8x256xf32, #tpu.memory_space<vmem>>, vector<1x256xf32>
    %144 = vector.broadcast %143 : vector<1x256xf32> to vector<8x256xf32>
    %145 = arith.mulf %142, %144 : vector<8x256xf32>
    %c15_i32_76 = arith.constant 15 : i32
    %146 = tpu.dynamic_rotate %110 by %c15_i32_76 dim 1 : vector<8x256xf32>, i32 -> vector<8x256xf32>
    %c2_77 = arith.constant 2 : index
    %c0_78 = arith.constant 0 : index
    %147 = vector.load %arg6[%c2_77, %c0_78] : memref<8x256xf32, #tpu.memory_space<vmem>>, vector<1x256xf32>
    %148 = vector.broadcast %147 : vector<1x256xf32> to vector<8x256xf32>
    %149 = arith.mulf %146, %148 : vector<8x256xf32>
    %c1_i32_79 = arith.constant 1 : i32
    %150 = tpu.dynamic_rotate %110 by %c1_i32_79 dim 1 : vector<8x256xf32>, i32 -> vector<8x256xf32>
    %c3_80 = arith.constant 3 : index
    %c0_81 = arith.constant 0 : index
    %151 = vector.load %arg6[%c3_80, %c0_81] : memref<8x256xf32, #tpu.memory_space<vmem>>, vector<1x256xf32>
    %152 = vector.broadcast %151 : vector<1x256xf32> to vector<8x256xf32>
    %153 = arith.mulf %150, %152 : vector<8x256xf32>
    %c255_i32_82 = arith.constant 255 : i32
    %154 = tpu.dynamic_rotate %110 by %c255_i32_82 dim 1 : vector<8x256xf32>, i32 -> vector<8x256xf32>
    %c4_83 = arith.constant 4 : index
    %c0_84 = arith.constant 0 : index
    %155 = vector.load %arg6[%c4_83, %c0_84] : memref<8x256xf32, #tpu.memory_space<vmem>>, vector<1x256xf32>
    %156 = vector.broadcast %155 : vector<1x256xf32> to vector<8x256xf32>
    %157 = arith.mulf %154, %156 : vector<8x256xf32>
    %c241_i32_85 = arith.constant 241 : i32
    %158 = tpu.dynamic_rotate %110 by %c241_i32_85 dim 1 : vector<8x256xf32>, i32 -> vector<8x256xf32>
    %c5_86 = arith.constant 5 : index
    %c0_87 = arith.constant 0 : index
    %159 = vector.load %arg6[%c5_86, %c0_87] : memref<8x256xf32, #tpu.memory_space<vmem>>, vector<1x256xf32>
    %160 = vector.broadcast %159 : vector<1x256xf32> to vector<8x256xf32>
    %161 = arith.mulf %158, %160 : vector<8x256xf32>
    %c240_i32_88 = arith.constant 240 : i32
    %162 = tpu.dynamic_rotate %110 by %c240_i32_88 dim 1 : vector<8x256xf32>, i32 -> vector<8x256xf32>
    %c6_89 = arith.constant 6 : index
    %c0_90 = arith.constant 0 : index
    %163 = vector.load %arg6[%c6_89, %c0_90] : memref<8x256xf32, #tpu.memory_space<vmem>>, vector<1x256xf32>
    %164 = vector.broadcast %163 : vector<1x256xf32> to vector<8x256xf32>
    %165 = arith.mulf %162, %164 : vector<8x256xf32>
    %c239_i32_91 = arith.constant 239 : i32
    %166 = tpu.dynamic_rotate %110 by %c239_i32_91 dim 1 : vector<8x256xf32>, i32 -> vector<8x256xf32>
    %c7_92 = arith.constant 7 : index
    %c0_93 = arith.constant 0 : index
    %167 = vector.load %arg6[%c7_92, %c0_93] : memref<8x256xf32, #tpu.memory_space<vmem>>, vector<1x256xf32>
    %168 = vector.broadcast %167 : vector<1x256xf32> to vector<8x256xf32>
    %169 = arith.mulf %166, %168 : vector<8x256xf32>
    %170 = tpu.concatenate %141, %145, %149, %153, %110, %157, %161, %165, %169 in 0 : vector<8x256xf32>, vector<8x256xf32>, vector<8x256xf32>, vector<8x256xf32>, vector<8x256xf32>, vector<8x256xf32>, vector<8x256xf32>, vector<8x256xf32>, vector<8x256xf32> -> vector<72x256xf32>
    %171 = arith.truncf %170 : vector<72x256xf32> to vector<72x256xbf16>
    %c17_i32_94 = arith.constant 17 : i32
    %172 = tpu.dynamic_rotate %137 by %c17_i32_94 dim 1 : vector<8x256xf32>, i32 -> vector<8x256xf32>
    %c0_95 = arith.constant 0 : index
    %c0_96 = arith.constant 0 : index
    %173 = vector.load %arg6[%c0_95, %c0_96] : memref<8x256xf32, #tpu.memory_space<vmem>>, vector<1x256xf32>
    %174 = vector.broadcast %173 : vector<1x256xf32> to vector<8x256xf32>
    %175 = arith.mulf %172, %174 : vector<8x256xf32>
    %c16_i32_97 = arith.constant 16 : i32
    %176 = tpu.dynamic_rotate %137 by %c16_i32_97 dim 1 : vector<8x256xf32>, i32 -> vector<8x256xf32>
    %c1_98 = arith.constant 1 : index
    %c0_99 = arith.constant 0 : index
    %177 = vector.load %arg6[%c1_98, %c0_99] : memref<8x256xf32, #tpu.memory_space<vmem>>, vector<1x256xf32>
    %178 = vector.broadcast %177 : vector<1x256xf32> to vector<8x256xf32>
    %179 = arith.mulf %176, %178 : vector<8x256xf32>
    %c15_i32_100 = arith.constant 15 : i32
    %180 = tpu.dynamic_rotate %137 by %c15_i32_100 dim 1 : vector<8x256xf32>, i32 -> vector<8x256xf32>
    %c2_101 = arith.constant 2 : index
    %c0_102 = arith.constant 0 : index
    %181 = vector.load %arg6[%c2_101, %c0_102] : memref<8x256xf32, #tpu.memory_space<vmem>>, vector<1x256xf32>
    %182 = vector.broadcast %181 : vector<1x256xf32> to vector<8x256xf32>
    %183 = arith.mulf %180, %182 : vector<8x256xf32>
    %c1_i32_103 = arith.constant 1 : i32
    %184 = tpu.dynamic_rotate %137 by %c1_i32_103 dim 1 : vector<8x256xf32>, i32 -> vector<8x256xf32>
    %c3_104 = arith.constant 3 : index
    %c0_105 = arith.constant 0 : index
    %185 = vector.load %arg6[%c3_104, %c0_105] : memref<8x256xf32, #tpu.memory_space<vmem>>, vector<1x256xf32>
    %186 = vector.broadcast %185 : vector<1x256xf32> to vector<8x256xf32>
    %187 = arith.mulf %184, %186 : vector<8x256xf32>
    %c255_i32_106 = arith.constant 255 : i32
    %188 = tpu.dynamic_rotate %137 by %c255_i32_106 dim 1 : vector<8x256xf32>, i32 -> vector<8x256xf32>
    %c4_107 = arith.constant 4 : index
    %c0_108 = arith.constant 0 : index
    %189 = vector.load %arg6[%c4_107, %c0_108] : memref<8x256xf32, #tpu.memory_space<vmem>>, vector<1x256xf32>
    %190 = vector.broadcast %189 : vector<1x256xf32> to vector<8x256xf32>
    %191 = arith.mulf %188, %190 : vector<8x256xf32>
    %c241_i32_109 = arith.constant 241 : i32
    %192 = tpu.dynamic_rotate %137 by %c241_i32_109 dim 1 : vector<8x256xf32>, i32 -> vector<8x256xf32>
    %c5_110 = arith.constant 5 : index
    %c0_111 = arith.constant 0 : index
    %193 = vector.load %arg6[%c5_110, %c0_111] : memref<8x256xf32, #tpu.memory_space<vmem>>, vector<1x256xf32>
    %194 = vector.broadcast %193 : vector<1x256xf32> to vector<8x256xf32>
    %195 = arith.mulf %192, %194 : vector<8x256xf32>
    %c240_i32_112 = arith.constant 240 : i32
    %196 = tpu.dynamic_rotate %137 by %c240_i32_112 dim 1 : vector<8x256xf32>, i32 -> vector<8x256xf32>
    %c6_113 = arith.constant 6 : index
    %c0_114 = arith.constant 0 : index
    %197 = vector.load %arg6[%c6_113, %c0_114] : memref<8x256xf32, #tpu.memory_space<vmem>>, vector<1x256xf32>
    %198 = vector.broadcast %197 : vector<1x256xf32> to vector<8x256xf32>
    %199 = arith.mulf %196, %198 : vector<8x256xf32>
    %c239_i32_115 = arith.constant 239 : i32
    %200 = tpu.dynamic_rotate %137 by %c239_i32_115 dim 1 : vector<8x256xf32>, i32 -> vector<8x256xf32>
    %c7_116 = arith.constant 7 : index
    %c0_117 = arith.constant 0 : index
    %201 = vector.load %arg6[%c7_116, %c0_117] : memref<8x256xf32, #tpu.memory_space<vmem>>, vector<1x256xf32>
    %202 = vector.broadcast %201 : vector<1x256xf32> to vector<8x256xf32>
    %203 = arith.mulf %200, %202 : vector<8x256xf32>
    %204 = tpu.concatenate %175, %179, %183, %187, %137, %191, %195, %199, %203 in 0 : vector<8x256xf32>, vector<8x256xf32>, vector<8x256xf32>, vector<8x256xf32>, vector<8x256xf32>, vector<8x256xf32>, vector<8x256xf32>, vector<8x256xf32>, vector<8x256xf32> -> vector<72x256xf32>
    %205 = arith.truncf %204 : vector<72x256xf32> to vector<72x256xbf16>
    %206 = tpu.concatenate %171, %205 in 1 : vector<72x256xbf16>, vector<72x256xbf16> -> vector<72x512xbf16>
    %c0_118 = arith.constant 0 : index
    %c0_119 = arith.constant 0 : index
    %207 = vector.load %arg3[%c0_118, %c0_119] : memref<8x72xbf16, #tpu.memory_space<vmem>>, vector<8x72xbf16>
    %cst_120 = arith.constant dense<0.000000e+00> : vector<8x512xf32>
    %208 = tpu.matmul %207, %206, %cst_120 {dimension_numbers = #tpu.dot_dimension_numbers<[1], [0], [0], [1], [0, 0, 1, 1], [], []>} : vector<8x72xbf16>, vector<72x512xbf16>, vector<8x512xf32> -> vector<8x512xf32>
    %209 = vector.broadcast %4 : vector<8x1xf32> to vector<8x512xf32>
    %210 = arith.addf %208, %209 : vector<8x512xf32>
    %211 = vector.extract_strided_slice %210 {offsets = [0, 0], sizes = [8, 256], strides = [1, 1]} : vector<8x512xf32> to vector<8x256xf32>
    %cst_121 = arith.constant dense<0.000000e+00> : vector<8xf32>
    %212 = vector.multi_reduction <add>, %211, %cst_121 [1] : vector<8x256xf32> to vector<8xf32>
    %213 = vector.shape_cast %212 : vector<8xf32> to vector<8x1xf32>
    %214 = arith.mulf %211, %211 : vector<8x256xf32>
    %cst_122 = arith.constant dense<0.000000e+00> : vector<8xf32>
    %215 = vector.multi_reduction <add>, %214, %cst_122 [1] : vector<8x256xf32> to vector<8xf32>
    %216 = vector.shape_cast %215 : vector<8xf32> to vector<8x1xf32>
    %cst_123 = arith.constant dense<0.000000e+00> : vector<8x1xf32>
    %217 = tpu.matmul %0, %213, %cst_123 {dimension_numbers = #tpu.dot_dimension_numbers<[1], [0], [0], [1], [0, 0, 1, 1], [], []>} : vector<8x8xf32>, vector<8x1xf32>, vector<8x1xf32> -> vector<8x1xf32>
    %cst_124 = arith.constant 4.8828125E-4 : f32
    %218 = vector.broadcast %cst_124 : f32 to vector<8x1xf32>
    %219 = arith.mulf %217, %218 : vector<8x1xf32>
    %cst_125 = arith.constant dense<0.000000e+00> : vector<8x1xf32>
    %220 = tpu.matmul %0, %216, %cst_125 {dimension_numbers = #tpu.dot_dimension_numbers<[1], [0], [0], [1], [0, 0, 1, 1], [], []>} : vector<8x8xf32>, vector<8x1xf32>, vector<8x1xf32> -> vector<8x1xf32>
    %cst_126 = arith.constant 4.8828125E-4 : f32
    %221 = vector.broadcast %cst_126 : f32 to vector<8x1xf32>
    %222 = arith.mulf %220, %221 : vector<8x1xf32>
    %223 = arith.mulf %219, %219 : vector<8x1xf32>
    %224 = arith.subf %222, %223 : vector<8x1xf32>
    %225 = vector.broadcast %219 : vector<8x1xf32> to vector<8x256xf32>
    %226 = arith.subf %211, %225 : vector<8x256xf32>
    %cst_127 = arith.constant 9.99999974E-6 : f32
    %227 = vector.broadcast %cst_127 : f32 to vector<8x1xf32>
    %228 = arith.addf %224, %227 : vector<8x1xf32>
    %229 = math.rsqrt %228 : vector<8x1xf32>
    %230 = vector.broadcast %229 : vector<8x1xf32> to vector<8x256xf32>
    %231 = arith.mulf %226, %230 : vector<8x256xf32>
    %232 = vector.broadcast %5 : vector<8x1xf32> to vector<8x256xf32>
    %233 = arith.mulf %231, %232 : vector<8x256xf32>
    %234 = vector.broadcast %6 : vector<8x1xf32> to vector<8x256xf32>
    %235 = arith.addf %233, %234 : vector<8x256xf32>
    %cst_128 = arith.constant 0.000000e+00 : f32
    %236 = vector.broadcast %cst_128 : f32 to vector<8x256xf32>
    %237 = arith.maximumf %235, %236 : vector<8x256xf32>
    %c0_129 = arith.constant 0 : index
    %c0_130 = arith.constant 0 : index
    %c0_131 = arith.constant 0 : index
    %238 = vector.load %arg1[%c0_129, %c0_130, %c0_131] : memref<2x8x256xf32, #tpu.memory_space<vmem>>, vector<1x8x256xf32>
    %239 = vector.shape_cast %238 : vector<1x8x256xf32> to vector<8x256xf32>
    %240 = arith.addf %239, %237 : vector<8x256xf32>
    %cst_132 = arith.constant 0.000000e+00 : f32
    %241 = vector.broadcast %cst_132 : f32 to vector<8x256xf32>
    %242 = arith.maximumf %240, %241 : vector<8x256xf32>
    %c0_133 = arith.constant 0 : index
    %c0_134 = arith.constant 0 : index
    %c0_135 = arith.constant 0 : index
    %243 = vector.load %arg7[%c0_133, %c0_134, %c0_135] : memref<2x8x256xf32, #tpu.memory_space<vmem>>, vector<1x8x256xf32>
    %244 = vector.shape_cast %243 : vector<1x8x256xf32> to vector<8x256xf32>
    %245 = vector.shape_cast %242 : vector<8x256xf32> to vector<1x8x256xf32>
    tpu.vector_store %arg7[%c0_133, %c0_134, %c0_135], %245 {strides = array<i32>} : memref<2x8x256xf32, #tpu.memory_space<vmem>>, vector<1x8x256xf32>,
    %246 = vector.extract_strided_slice %210 {offsets = [0, 256], sizes = [8, 256], strides = [1, 1]} : vector<8x512xf32> to vector<8x256xf32>
    %cst_136 = arith.constant dense<0.000000e+00> : vector<8xf32>
    %247 = vector.multi_reduction <add>, %246, %cst_136 [1] : vector<8x256xf32> to vector<8xf32>
    %248 = vector.shape_cast %247 : vector<8xf32> to vector<8x1xf32>
    %249 = arith.mulf %246, %246 : vector<8x256xf32>
    %cst_137 = arith.constant dense<0.000000e+00> : vector<8xf32>
    %250 = vector.multi_reduction <add>, %249, %cst_137 [1] : vector<8x256xf32> to vector<8xf32>
    %251 = vector.shape_cast %250 : vector<8xf32> to vector<8x1xf32>
    %cst_138 = arith.constant dense<0.000000e+00> : vector<8x1xf32>
    %252 = tpu.matmul %0, %248, %cst_138 {dimension_numbers = #tpu.dot_dimension_numbers<[1], [0], [0], [1], [0, 0, 1, 1], [], []>} : vector<8x8xf32>, vector<8x1xf32>, vector<8x1xf32> -> vector<8x1xf32>
    %cst_139 = arith.constant 4.8828125E-4 : f32
    %253 = vector.broadcast %cst_139 : f32 to vector<8x1xf32>
    %254 = arith.mulf %252, %253 : vector<8x1xf32>
    %cst_140 = arith.constant dense<0.000000e+00> : vector<8x1xf32>
    %255 = tpu.matmul %0, %251, %cst_140 {dimension_numbers = #tpu.dot_dimension_numbers<[1], [0], [0], [1], [0, 0, 1, 1], [], []>} : vector<8x8xf32>, vector<8x1xf32>, vector<8x1xf32> -> vector<8x1xf32>
    %cst_141 = arith.constant 4.8828125E-4 : f32
    %256 = vector.broadcast %cst_141 : f32 to vector<8x1xf32>
    %257 = arith.mulf %255, %256 : vector<8x1xf32>
    %258 = arith.mulf %254, %254 : vector<8x1xf32>
    %259 = arith.subf %257, %258 : vector<8x1xf32>
    %260 = vector.broadcast %254 : vector<8x1xf32> to vector<8x256xf32>
    %261 = arith.subf %246, %260 : vector<8x256xf32>
    %cst_142 = arith.constant 9.99999974E-6 : f32
    %262 = vector.broadcast %cst_142 : f32 to vector<8x1xf32>
    %263 = arith.addf %259, %262 : vector<8x1xf32>
    %264 = math.rsqrt %263 : vector<8x1xf32>
    %265 = vector.broadcast %264 : vector<8x1xf32> to vector<8x256xf32>
    %266 = arith.mulf %261, %265 : vector<8x256xf32>
    %267 = vector.broadcast %5 : vector<8x1xf32> to vector<8x256xf32>
    %268 = arith.mulf %266, %267 : vector<8x256xf32>
    %269 = vector.broadcast %6 : vector<8x1xf32> to vector<8x256xf32>
    %270 = arith.addf %268, %269 : vector<8x256xf32>
    %cst_143 = arith.constant 0.000000e+00 : f32
    %271 = vector.broadcast %cst_143 : f32 to vector<8x256xf32>
    %272 = arith.maximumf %270, %271 : vector<8x256xf32>
    %c1_144 = arith.constant 1 : index
    %c0_145 = arith.constant 0 : index
    %c0_146 = arith.constant 0 : index
    %273 = vector.load %arg1[%c1_144, %c0_145, %c0_146] : memref<2x8x256xf32, #tpu.memory_space<vmem>>, vector<1x8x256xf32>
    %274 = vector.shape_cast %273 : vector<1x8x256xf32> to vector<8x256xf32>
    %275 = arith.addf %274, %272 : vector<8x256xf32>
    %cst_147 = arith.constant 0.000000e+00 : f32
    %276 = vector.broadcast %cst_147 : f32 to vector<8x256xf32>
    %277 = arith.maximumf %275, %276 : vector<8x256xf32>
    %c1_148 = arith.constant 1 : index
    %c0_149 = arith.constant 0 : index
    %c0_150 = arith.constant 0 : index
    %278 = vector.load %arg7[%c1_148, %c0_149, %c0_150] : memref<2x8x256xf32, #tpu.memory_space<vmem>>, vector<1x8x256xf32>
    %279 = vector.shape_cast %278 : vector<1x8x256xf32> to vector<8x256xf32>
    %280 = vector.shape_cast %277 : vector<8x256xf32> to vector<1x8x256xf32>
    tpu.vector_store %arg7[%c1_148, %c0_149, %c0_150], %280 {strides = array<i32>} : memref<2x8x256xf32, #tpu.memory_space<vmem>>, vector<1x8x256xf32>,
    return
  }
  func.func @transform_0(%arg0: i32) -> (i32, i32, i32) {
    %c0_i32 = arith.constant 0 : i32
    %c0_i32_0 = arith.constant 0 : i32
    %c0_i32_1 = arith.constant 0 : i32
    return %arg0, %c0_i32, %c0_i32_0 : i32, i32, i32
  }
  func.func @transform_1(%arg0: i32) -> (i32, i32) {
    %c0_i32 = arith.constant 0 : i32
    %c0_i32_0 = arith.constant 0 : i32
    %c0_i32_1 = arith.constant 0 : i32
    return %c0_i32, %c0_i32_0 : i32, i32
  }
  func.func @transform_2(%arg0: i32) -> (i32, i32) {
    %c0_i32 = arith.constant 0 : i32
    %c0_i32_0 = arith.constant 0 : i32
    %c0_i32_1 = arith.constant 0 : i32
    return %c0_i32, %c0_i32_0 : i32, i32
  }
  func.func @transform_3(%arg0: i32) -> (i32, i32) {
    %c0_i32 = arith.constant 0 : i32
    %c0_i32_0 = arith.constant 0 : i32
    %c0_i32_1 = arith.constant 0 : i32
    return %c0_i32, %c0_i32_0 : i32, i32
  }
  func.func @transform_4(%arg0: i32) -> (i32, i32) {
    %c0_i32 = arith.constant 0 : i32
    %c0_i32_0 = arith.constant 0 : i32
    %c0_i32_1 = arith.constant 0 : i32
    return %c0_i32, %c0_i32_0 : i32, i32
  }
  func.func @transform_5(%arg0: i32) -> (i32, i32) {
    %c0_i32 = arith.constant 0 : i32
    %c0_i32_0 = arith.constant 0 : i32
    %c0_i32_1 = arith.constant 0 : i32
    return %c0_i32, %c0_i32_0 : i32, i32
  }
  func.func @transform_6(%arg0: i32) -> (i32, i32, i32) {
    %c0_i32 = arith.constant 0 : i32
    %c0_i32_0 = arith.constant 0 : i32
    %c0_i32_1 = arith.constant 0 : i32
    return %arg0, %c0_i32, %c0_i32_0 : i32, i32, i32
  }
}

</mosaic_0001>

<bundles_post_ra>
// kernel: tpu_custom_call.1
= control target key start
LH: loop header
LB: loop body
LE: loop exit
PB: predicated region body
PF: predicated region fallthrough
CT: control target
= control target key end

     0   :  { %11 = vsyncpa [#allocation3], 0  ;;  %s2408_s0 = inlined_call_operand.hbm [shape: f32[2,8,256], index: 0, kind: input, shape index: {}]   ;;  %s2409_s1 = inlined_call_operand.hbm [shape: bf16[8,72], index: 1, kind: input, shape index: {}]   ;;  %s2410_s2 = inlined_call_operand.hbm [shape: bf16[8,72], index: 2, kind: input, shape index: {}]   ;;  %s2411_s3 = inlined_call_operand.hbm [shape: f32[8,8], index: 3, kind: input, shape index: {}]   ;;  %s2412_s4 = inlined_call_operand.hbm [shape: f32[8,8], index: 4, kind: input, shape index: {}]   ;;  %s2413_s5 = inlined_call_operand.vmem [shape: f32[8,256], index: 5, kind: input, shape index: {}]   ;;  %s2414_s6 = inlined_call_operand.hbm [shape: f32[2,8,256], index: 6, kind: output, shape index: {}]  }
   0x1   :  { %12 = vsyncpa [#allocation6], 0 }
   0x2   :  { %13 = vsyncpa [#allocation9], 0 }
   0x3   :  { %14 = vsyncpa [#allocation4], 0  ;;  %s1721_s21 = smov [#allocation5]   ;;  %s1722_s23 = smov [#allocation8]  }
   0x4   :  { %s33_s22 = sshll.u32 %s1721_s21, 4  ;;  %s53_s24 = sshll.u32 %s1722_s23, 4  ;;  %s34_s22 = int_to_ptr.vmem [resolvable:$true] %s33_s22  ;;  %s54_s24 = int_to_ptr.vmem [resolvable:$true] %s53_s24 }
   0x5   :  { %s1581_s27 = scalar_lea.hbm %s2409_s1, 64 }
   0x6   :  { %p1582_p0 = scmp.ne.s32.totalorder %s2409_s1, %s1581_s27  ;;  %p1585_p1 = scmp.lt.u32.totalorder %s1581_s27, %s2409_s1 }
   0x8   :  { %p1587_p2 = pnand %p1585_p1, %p1582_p0 }
   0xa   :  { %1590 = shalt.err (!%p1587_p2)
}
   0xb   :  { %s1591_s8 = scalar_lea.vmem %s34_s22, 64  ;;  %p1596_p4 = scmp.lt.s32.totalorder %s34_s22, %s34_s22 }
   0xc   :  { %p1592_p3 = scmp.ne.s32.totalorder %s34_s22, %s1591_s8  ;;  %p1597_p5 = scmp.lt.s32.totalorder %s1591_s8, %s1591_s8 }
   0xe   :  { %p1598_p6 = por %p1597_p5, %p1596_p4 }
  0x10   :  { %p1599_p7 = pnand %p1598_p6, %p1592_p3 }
  0x12   :  { %1602 = shalt.err (!%p1599_p7)
}
  0x13   :  { %36 = dma.hbm_to_vmem [thread:$0]  %s2409_s1, 64, %s34_s22, [#allocation6]  }
  0x14   :  { %s1603_s13 = scalar_lea.hbm %s2411_s3, 128 }
  0x15   :  { %p1604_p8 = scmp.ne.s32.totalorder %s2411_s3, %s1603_s13  ;;  %p1607_p9 = scmp.lt.u32.totalorder %s1603_s13, %s2411_s3 }
  0x17   :  { %p1609_p10 = pnand %p1607_p9, %p1604_p8 }
  0x19   :  { %1612 = shalt.err (!%p1609_p10)
}
  0x1a   :  { %s1613_s18 = scalar_lea.vmem %s54_s24, 128  ;;  %p1618_p12 = scmp.lt.s32.totalorder %s54_s24, %s54_s24 }
  0x1b   :  { %p1614_p11 = scmp.ne.s32.totalorder %s54_s24, %s1613_s18  ;;  %p1619_p13 = scmp.lt.s32.totalorder %s1613_s18, %s1613_s18 }
  0x1d   :  { %p1620_p0 = por %p1619_p13, %p1618_p12 }
  0x1f   :  { %p1621_p1 = pnand %p1620_p0, %p1614_p11 }
  0x21   :  { %1624 = shalt.err (!%p1621_p1)
}
  0x22   :  { %56 = dma.hbm_to_vmem [thread:$0]  %s2411_s3, 128, %s54_s24, [#allocation9]  }
  0x23   :  { %s1723_s20 = smov [#allocation2]   ;;  %s1625_s25 = scalar_lea.hbm %s2408_s0, 512 }
  0x24   :  { %s20_s21 = sshll.u32 %s1723_s20, 4  ;;  %p1626_p2 = scmp.ne.s32.totalorder %s2408_s0, %s1625_s25  ;;  %s21_s21 = int_to_ptr.vmem [resolvable:$true] %s20_s21 }
  0x25   :  { %p1629_p3 = scmp.lt.u32.totalorder %s1625_s25, %s2408_s0 }
  0x27   :  { %p1631_p4 = pnand %p1629_p3, %p1626_p2 }
  0x29   :  { %1634 = shalt.err (!%p1631_p4)
}
  0x2a   :  { %s1635_s30 = scalar_lea.vmem %s21_s21, 512  ;;  %p1640_p6 = scmp.lt.s32.totalorder %s21_s21, %s21_s21 }
  0x2b   :  { %p1636_p5 = scmp.ne.s32.totalorder %s21_s21, %s1635_s30  ;;  %p1641_p7 = scmp.lt.s32.totalorder %s1635_s30, %s1635_s30 }
  0x2d   :  { %p1642_p8 = por %p1641_p7, %p1640_p6 }
  0x2f   :  { %p1643_p9 = pnand %p1642_p8, %p1636_p5 }
  0x31   :  { %1646 = shalt.err (!%p1643_p9)
}
  0x32   :  { %s1724_s3 = smov 256   ;;  %s1725_s24 = smov 16  }
  0x33   :  { %26 = dma.hbm_to_vmem [thread:$0]  %s2408_s0, 512, %s21_s21, [#allocation3], %s1724_s3, %s1724_s3, %s1725_s24  }
  0x34   :  { %s1726_s9 = smov [#allocation7]   ;;  %s1727_s11 = smov [#allocation10]  }
  0x35   :  { %s43_s10 = sshll.u32 %s1726_s9, 4  ;;  %s63_s12 = sshll.u32 %s1727_s11, 4  ;;  %s44_s10 = int_to_ptr.vmem [resolvable:$true] %s43_s10  ;;  %s64_s12 = int_to_ptr.vmem [resolvable:$true] %s63_s12 }
  0x36   :  { %s1647_s15 = scalar_lea.hbm %s2410_s2, 64 }
  0x37   :  { %p1648_p10 = scmp.ne.s32.totalorder %s2410_s2, %s1647_s15  ;;  %p1651_p11 = scmp.lt.u32.totalorder %s1647_s15, %s2410_s2 }
  0x39   :  { %p1653_p12 = pnand %p1651_p11, %p1648_p10 }
  0x3b   :  { %1656 = shalt.err (!%p1653_p12)
}
  0x3c   :  { %s1657_s0 = scalar_lea.vmem %s44_s10, 64  ;;  %p1662_p0 = scmp.lt.s32.totalorder %s44_s10, %s44_s10 }
  0x3d   :  { %p1658_p13 = scmp.ne.s32.totalorder %s44_s10, %s1657_s0  ;;  %p1663_p1 = scmp.lt.s32.totalorder %s1657_s0, %s1657_s0 }
  0x3f   :  { %p1664_p2 = por %p1663_p1, %p1662_p0 }
  0x41   :  { %p1665_p3 = pnand %p1664_p2, %p1658_p13 }
  0x43   :  { %1668 = shalt.err (!%p1665_p3)
}
  0x44   :  { %46 = dma.hbm_to_vmem [thread:$0]  %s2410_s2, 64, %s44_s10, [#allocation6]  }
  0x45   :  { %s1669_s23 = scalar_lea.hbm %s2412_s4, 128 }
  0x46   :  { %p1670_p4 = scmp.ne.s32.totalorder %s2412_s4, %s1669_s23  ;;  %p1673_p5 = scmp.lt.u32.totalorder %s1669_s23, %s2412_s4 }
  0x48   :  { %p1675_p6 = pnand %p1673_p5, %p1670_p4 }
  0x4a   :  { %1678 = shalt.err (!%p1675_p6)
}
  0x4b   :  { %s1679_s29 = scalar_lea.vmem %s64_s12, 128  ;;  %p1684_p8 = scmp.lt.s32.totalorder %s64_s12, %s64_s12 }
  0x4c   :  { %p1680_p7 = scmp.ne.s32.totalorder %s64_s12, %s1679_s29  ;;  %p1685_p9 = scmp.lt.s32.totalorder %s1679_s29, %s1679_s29 }
  0x4e   :  { %p1686_p10 = por %p1685_p9, %p1684_p8 }
  0x50   :  { %p1687_p11 = pnand %p1686_p10, %p1680_p7 }
  0x52   :  { %1690 = shalt.err (!%p1687_p11)
}
  0x53   :  { %66 = dma.hbm_to_vmem [thread:$0]  %s2412_s4, 128, %s64_s12, [#allocation9]  }
  0x54   :  { %1713 = dma.done.wait [#allocation3], 512  }
  0x55   :  { %1714 = vsyncadd [#allocation3], 4294966784 }
  0x56   :  { %1715 = dma.done.wait [#allocation6], 128  }
  0x57   :  { %1716 = vsyncadd [#allocation6], 4294967168 }
  0x58   :  { %1717 = dma.done.wait [#allocation9], 256  }
  0x59   :  { %1718 = vsyncadd [#allocation9], 4294967040  ;;  %v1842_v0 = vld [vmem:[#allocation2] sm:$0xff]  ;;  %s1728_s7 = smov 17   ;;  %v1848_v1 = vld [vmem:[#allocation2 + $0x8] sm:$0xff]  ;;  %s1729_s4 = smov 15   ;;  %v96_v6 = vlaneseq }
  0x5a   :  { %115 = vrot.lane.b32.xlu1 %v1842_v0, %s1725_s24  ;;  %92 = vrot.lane.b32.xlu0 %v1842_v0, %s1728_s7  ;;  %s1730_s8 = smov 1   ;;  %v1862_v2 = vld [vmem:[#allocation2 + $0x18] sm:$0xff]  ;;  %v1864_v3 = vld [vmem:[#allocation2 + $0x10] sm:$0xff]  ;;  %s1731_s9 = smov 127   ;;  %v1734_v4 = vmov 0   ;;  %v1917_v5 = vld [vmem:[#allocation8] sm:$0xff] }
  0x5b   :  { %s1732_s10 = smov 113   ;;  %s1733_s11 = smov 112   ;;  %408 = vmatprep.mubr.bf16.mxu0 %v1734_v4  ;;  %449 = vmatprep.mubr.bf16.mxu1 %v1734_v4  ;;  %v104_v7 = vshrl.u32 %v96_v6, 7  ;;  %v1920_v8 = vand.u32 127, %v96_v6  ;;  %vm363_vm8 = vcmask 1043456   ;;  %vm359_vm9 = vcmask 588800  }
  0x5c   :  { %1560 = vset.pattern.permute.xlu0 %v1734_v4  ;;  %s1735_s12 = smov 111   ;;  %v1458_v11 = vld [vmem:[%s2413_s5 + $0x1] ss:$8 sm:$0x3]  ;;  %vm1737_vm10 = vmmov 0   ;;  %vm466_vm11 = vcmask 64512  }
  0x5d   :  { %v1922_v9 = vsub.s32 0, %v104_v7  ;;  %v1924_v10 = vsub.s32 1, %v104_v7  ;;  %v101_v12 = vld [vmem:[%s2413_s5] ss:$8 sm:$0x3]  ;;  %vm119_vm0 = vcmp.lt.s32.totalorder %v1920_v8, 16 }
  0x5e   :  { %117 = vrot.lane.b32.xlu1 %v1848_v1, %s1725_s24  ;;  %94 = vrot.lane.b32.xlu0 %v1848_v1, %s1728_s7  ;;  %vm98_vm1 = vcmp.lt.s32.totalorder %v1920_v8, 17  ;;  %v1459_v29 = vld [vmem:[%s2413_s5 + $0x2] ss:$8 sm:$0x3]  ;;  %vm141_vm2 = vcmp.lt.s32.totalorder %v1920_v8, 15  ;;  %vm163_vm3 = vcmp.lt.s32.totalorder %v1920_v8, 1 }
  0x5f   :  { %v1935_v15 = vrot.slane %v1458_v11, %v1922_v9  ;;  %v1938_v16 = vrot.slane %v101_v12, %v1922_v9  ;;  %v1941_v17 = vrot.slane %v101_v12, %v1924_v10  ;;  %v1944_v18 = vrot.slane %v1458_v11, %v1924_v10  ;;  %v1460_v30 = vld [vmem:[%s2413_s5 + $0x3] ss:$8 sm:$0x3]  ;;  %v1461_v53 = vld [vmem:[%s2413_s5 + $0x4] ss:$8 sm:$0x3] }
  0x60   :  { %v1967_v35 = vrot.slane %v1459_v29, %v1922_v9  ;;  %v1970_v36 = vrot.slane %v1459_v29, %v1924_v10  ;;  %v1973_v37 = vrot.slane %v1460_v30, %v1922_v9  ;;  %v1976_v38 = vrot.slane %v1460_v30, %v1924_v10 }
  0x61   :  { %vm185_vm4 = vcmp.lt.s32.totalorder %v1920_v8, 127  ;;  %v2003_v60 = vrot.slane %v1461_v53, %v1922_v9  ;;  %v2006_v61 = vrot.slane %v1461_v53, %v1924_v10  ;;  %vm207_vm5 = vcmp.lt.s32.totalorder %v1920_v8, 113 }
  0x62   :  { %139 = vrot.lane.b32.xlu1 %v1848_v1, %s1729_s4  ;;  %137 = vrot.lane.b32.xlu0 %v1842_v0, %s1729_s4  ;;  %vm229_vm6 = vcmp.lt.s32.totalorder %v1920_v8, 112  ;;  %vm251_vm7 = vcmp.lt.s32.totalorder %v1920_v8, 111 }
  0x66   :  { %161 = vrot.lane.b32.xlu1 %v1848_v1, %s1730_s8  ;;  %159 = vrot.lane.b32.xlu0 %v1842_v0, %s1730_s8 }
  0x6a   :  { %281 = vrot.lane.b32.xlu1 %v1862_v2, %s1728_s7  ;;  %279 = vrot.lane.b32.xlu0 %v1864_v3, %s1728_s7 }
  0x6e   :  { %289 = vrot.lane.b32.xlu1 %v1862_v2, %s1725_s24  ;;  %287 = vrot.lane.b32.xlu0 %v1864_v3, %s1725_s24 }
  0x72   :  { %183 = vrot.lane.b32.xlu1 %v1848_v1, %s1731_s9  ;;  %181 = vrot.lane.b32.xlu0 %v1842_v0, %s1731_s9 }
  0x76   :  { %297 = vrot.lane.b32.xlu1 %v1862_v2, %s1729_s4  ;;  %295 = vrot.lane.b32.xlu0 %v1864_v3, %s1729_s4 }
  0x7a   :  { %305 = vrot.lane.b32.xlu1 %v1862_v2, %s1730_s8  ;;  %303 = vrot.lane.b32.xlu0 %v1864_v3, %s1730_s8 }
  0x7e   :  { %205 = vrot.lane.b32.xlu1 %v1848_v1, %s1732_s10  ;;  %203 = vrot.lane.b32.xlu0 %v1842_v0, %s1732_s10 }
  0x82   :  { %227 = vrot.lane.b32.xlu1 %v1848_v1, %s1733_s11  ;;  %225 = vrot.lane.b32.xlu0 %v1842_v0, %s1733_s11 }
  0x86   :  { %313 = vrot.lane.b32.xlu1 %v1862_v2, %s1731_s9  ;;  %311 = vrot.lane.b32.xlu0 %v1864_v3, %s1731_s9 }
  0x8a   :  { %249 = vrot.lane.b32.xlu1 %v1848_v1, %s1735_s12  ;;  %247 = vrot.lane.b32.xlu0 %v1842_v0, %s1735_s12 }
  0x8e   :  { %321 = vrot.lane.b32.xlu1 %v1862_v2, %s1732_s10  ;;  %319 = vrot.lane.b32.xlu0 %v1864_v3, %s1732_s10 }
  0x92   :  { %329 = vrot.lane.b32.xlu1 %v1862_v2, %s1733_s11  ;;  %327 = vrot.lane.b32.xlu0 %v1864_v3, %s1733_s11 }
  0x96   :  { %337 = vrot.lane.b32.xlu1 %v1862_v2, %s1735_s12  ;;  %335 = vrot.lane.b32.xlu0 %v1864_v3, %s1735_s12 }
  0x9a   :  { %356 = vperm.xlu0 %1560, %v1917_v5  }
  0xcc   :  { %v116_v13 = vpop.permute.xlu1 %115  ;;  %v93_v14 = vpop.permute.xlu0 %92 }
  0xd0   :  { %v118_v19 = vpop.permute.xlu1 %117  ;;  %v95_v20 = vpop.permute.xlu0 %94 }
  0xd1   :  { %v120_v21 = vsel %vm119_vm0, %v116_v13, %v118_v19  ;;  %v121_v22 = vsel %vm119_vm0, %v118_v19, %v116_v13  ;;  %v99_v23 = vsel %vm98_vm1, %v93_v14, %v95_v20  ;;  %v100_v24 = vsel %vm98_vm1, %v95_v20, %v93_v14 }
  0xd2   :  { %v135_v25 = vmul.f32 %v1935_v15, %v121_v22  ;;  %v113_v26 = vmul.f32 %v1938_v16, %v100_v24  ;;  %v114_v27 = vmul.f32 %v1941_v17, %v99_v23  ;;  %v136_v28 = vmul.f32 %v1944_v18, %v120_v21 }
  0xd4   :  { %v140_v31 = vpop.permute.xlu1 %139  ;;  %v138_v32 = vpop.permute.xlu0 %137  ;;  %v270_v33 = vpack.c.bf16 %v136_v28, %v114_v27  ;;  %v269_v34 = vpack.c.bf16 %v135_v25, %v113_v26 }
  0xd5   :  { %v142_v39 = vsel %vm141_vm2, %v138_v32, %v140_v31  ;;  %v143_v40 = vsel %vm141_vm2, %v140_v31, %v138_v32 }
  0xd6   :  { %376 = vmatprep.subr.bf16.mxu0 %v270_v33  ;;  %v157_v45 = vmul.f32 %v1967_v35, %v143_v40  ;;  %v158_v46 = vmul.f32 %v1970_v36, %v142_v39  ;;  %v1462_v39 = vld [vmem:[%s2413_s5 + $0x5] ss:$8 sm:$0x3]  ;;  %v1463_v40 = vld [vmem:[%s2413_s5 + $0x6] ss:$8 sm:$0x3] }
  0xd7   :  { %377 = vmatpush1.bf16.msra.mxu0 %v269_v34 }
  0xd8   :  { %v162_v41 = vpop.permute.xlu1 %161  ;;  %v160_v42 = vpop.permute.xlu0 %159 }
  0xd9   :  { %v164_v43 = vsel %vm163_vm3, %v160_v42, %v162_v41  ;;  %v165_v44 = vsel %vm163_vm3, %v162_v41, %v160_v42 }
  0xda   :  { %v179_v47 = vmul.f32 %v1973_v37, %v165_v44  ;;  %v180_v48 = vmul.f32 %v1976_v38, %v164_v43 }
  0xdc   :  { %v282_v49 = vpop.permute.xlu1 %281  ;;  %v280_v50 = vpop.permute.xlu0 %279  ;;  %v272_v51 = vpack.c.bf16 %v180_v48, %v158_v46  ;;  %v271_v52 = vpack.c.bf16 %v179_v47, %v157_v45  ;;  %v2040_v45 = vrot.slane %v1462_v39, %v1922_v9  ;;  %v2043_v46 = vrot.slane %v1462_v39, %v1924_v10 }
  0xdd   :  { %v283_v54 = vsel %vm98_vm1, %v280_v50, %v282_v49  ;;  %v284_v55 = vsel %vm98_vm1, %v282_v49, %v280_v50  ;;  %v2047_v47 = vrot.slane %v1463_v40, %v1922_v9  ;;  %v2050_v48 = vrot.slane %v1463_v40, %v1924_v10 }
  0xde   :  { %378 = vmatprep.subr.bf16.mxu0 %v272_v51  ;;  %v285_v62 = vmul.f32 %v284_v55, %v1938_v16  ;;  %v286_v6 = vmul.f32 %v283_v54, %v1941_v17 }
  0xdf   :  { %379 = vmatpush1.bf16.msra.mxu0 %v271_v52 }
  0xe0   :  { %v290_v56 = vpop.permute.xlu1 %289  ;;  %v288_v57 = vpop.permute.xlu0 %287 }
  0xe1   :  { %v291_v58 = vsel %vm119_vm0, %v288_v57, %v290_v56  ;;  %v292_v59 = vsel %vm119_vm0, %v290_v56, %v288_v57 }
  0xe2   :  { %v293_v63 = vmul.f32 %v292_v59, %v1935_v15  ;;  %v294_v7 = vmul.f32 %v291_v58, %v1944_v18  ;;  %v1464_v59 = vld [vmem:[%s2413_s5 + $0x7] ss:$8 sm:$0x3]  ;;  %s1743_s5 = smov [#allocation11]  }
  0xe3   :  { %s1444_s28 = sshll.u32 %s1743_s5, 4  ;;  %s1445_s28 = int_to_ptr.vmem [resolvable:$true] %s1444_s28 }
  0xe4   :  { %v184_v11 = vpop.permute.xlu1 %183  ;;  %v182_v12 = vpop.permute.xlu0 %181  ;;  %v344_v13 = vpack.c.bf16 %v294_v7, %v286_v6  ;;  %v343_v14 = vpack.c.bf16 %v293_v63, %v285_v62  ;;  %s1691_s29 = scalar_lea.vmem %s1445_s28, 512  ;;  %p1696_p13 = scmp.lt.s32.totalorder %s1445_s28, %s1445_s28 }
  0xe5   :  { %v186_v19 = vsel %vm185_vm4, %v182_v12, %v184_v11  ;;  %v187_v20 = vsel %vm185_vm4, %v184_v11, %v182_v12  ;;  %p1692_p12 = scmp.ne.s32.totalorder %s1445_s28, %s1691_s29  ;;  %p1697_p0 = scmp.lt.s32.totalorder %s1691_s29, %s1691_s29 }
  0xe6   :  { %v201_v21 = vmul.f32 %v2003_v60, %v186_v19  ;;  %v202_v22 = vmul.f32 %v2006_v61, %v187_v20  ;;  %417 = vmatprep.subr.bf16.mxu1 %v344_v13  ;;  %v2075_v19 = vrot.slane %v1464_v59, %v1922_v9  ;;  %v2078_v20 = vrot.slane %v1464_v59, %v1924_v10 }
  0xe7   :  { %418 = vmatpush1.bf16.msra.mxu1 %v343_v14  ;;  %p1698_p1 = por %p1697_p0, %p1696_p13 }
  0xe8   :  { %v298_v23 = vpop.permute.xlu1 %297  ;;  %v296_v24 = vpop.permute.xlu0 %295  ;;  %v274_v25 = vpack.c.bf16 %v202_v22, %v1848_v1  ;;  %v273_v26 = vpack.c.bf16 %v201_v21, %v1842_v0 }
  0xe9   :  { %v299_v27 = vsel %vm141_vm2, %v296_v24, %v298_v23  ;;  %v300_v28 = vsel %vm141_vm2, %v298_v23, %v296_v24  ;;  %p1699_p2 = pnand %p1698_p1, %p1692_p12 }
  0xea   :  { %380 = vmatprep.subr.bf16.mxu0 %v274_v25  ;;  %v301_v1 = vmul.f32 %v300_v28, %v1967_v35  ;;  %v302_v0 = vmul.f32 %v299_v27, %v1970_v36 }
  0xeb   :  { %381 = vmatpush1.bf16.msra.mxu0 %v273_v26 }
  0xec   :  { %v306_v29 = vpop.permute.xlu1 %305  ;;  %v304_v30 = vpop.permute.xlu0 %303 }
  0xed   :  { %v307_v31 = vsel %vm163_vm3, %v304_v30, %v306_v29  ;;  %v308_v32 = vsel %vm163_vm3, %v306_v29, %v304_v30 }
  0xee   :  { %v309_v33 = vmul.f32 %v308_v32, %v1973_v37  ;;  %v310_v34 = vmul.f32 %v307_v31, %v1976_v38  ;;  %v353_v32 = vld [vmem:[#allocation5] sm:$0xf] }
  0xf0   :  { %v206_v41 = vpop.permute.xlu1 %205  ;;  %v204_v42 = vpop.permute.xlu0 %203  ;;  %v346_v43 = vpack.c.bf16 %v310_v34, %v302_v0  ;;  %v345_v44 = vpack.c.bf16 %v309_v33, %v301_v1 }
  0xf1   :  { %v208_v49 = vsel %vm207_vm5, %v204_v42, %v206_v41  ;;  %v209_v50 = vsel %vm207_vm5, %v206_v41, %v204_v42 }
  0xf2   :  { %419 = vmatprep.subr.bf16.mxu1 %v346_v43  ;;  %v223_v55 = vmul.f32 %v2040_v45, %v208_v49  ;;  %v224_v56 = vmul.f32 %v2043_v46, %v209_v50 }
  0xf3   :  { %420 = vmatpush1.bf16.msra.mxu1 %v345_v44 }
  0xf4   :  { %v228_v51 = vpop.permute.xlu1 %227  ;;  %v226_v52 = vpop.permute.xlu0 %225 }
  0xf5   :  { %v230_v53 = vsel %vm229_vm6, %v226_v52, %v228_v51  ;;  %v231_v54 = vsel %vm229_vm6, %v228_v51, %v226_v52 }
  0xf6   :  { %v245_v57 = vmul.f32 %v2047_v47, %v230_v53  ;;  %v246_v58 = vmul.f32 %v2050_v48, %v231_v54 }
  0xf8   :  { %v314_v62 = vpop.permute.xlu1 %313  ;;  %v312_v63 = vpop.permute.xlu0 %311  ;;  %v276_v6 = vpack.c.bf16 %v246_v58, %v224_v56  ;;  %v275_v7 = vpack.c.bf16 %v245_v57, %v223_v55  ;;  %v1736_v58 = vmov 0.0  }
  0xf9   :  { %v315_v11 = vsel %vm185_vm4, %v312_v63, %v314_v62  ;;  %v316_v12 = vsel %vm185_vm4, %v314_v62, %v312_v63 }
  0xfa   :  { %v317_v13 = vmul.f32 %v315_v11, %v2003_v60  ;;  %v318_v14 = vmul.f32 %v316_v12, %v2006_v61  ;;  %382 = vmatprep.subr.bf16.mxu0 %v276_v6 }
  0xfb   :  { %383 = vmatpush1.bf16.msra.mxu0 %v275_v7 }
  0xfc   :  { %v250_v21 = vpop.permute.xlu1 %249  ;;  %v248_v22 = vpop.permute.xlu0 %247  ;;  %v348_v23 = vpack.c.bf16 %v318_v14, %v1862_v2  ;;  %v347_v24 = vpack.c.bf16 %v317_v13, %v1864_v3 }
  0xfd   :  { %v252_v25 = vsel %vm251_vm7, %v248_v22, %v250_v21  ;;  %v253_v26 = vsel %vm251_vm7, %v250_v21, %v248_v22 }
  0xfe   :  { %v267_v27 = vmul.f32 %v2075_v19, %v252_v25  ;;  %v268_v9 = vmul.f32 %v2078_v20, %v253_v26  ;;  %421 = vmatprep.subr.bf16.mxu1 %v348_v23 }
  0xff   :  { %422 = vmatpush1.bf16.msra.mxu1 %v347_v24 }
 0x100   :  { %v277_v10 = vpack.c.bf16 %v267_v27, %v267_v27  ;;  %v278_v28 = vpack.c.bf16 %v268_v9, %v268_v9  ;;  %v322_v29 = vpop.permute.xlu1 %321  ;;  %v320_v30 = vpop.permute.xlu0 %319 }
 0x101   :  { %v323_v2 = vsel %vm207_vm5, %v320_v30, %v322_v29  ;;  %v324_v3 = vsel %vm207_vm5, %v322_v29, %v320_v30 }
 0x102   :  { %1465 = vmatprep.subr.msk.bf16.mxu0 %vm363_vm8, %v278_v28  ;;  %v365_v31 = vsel %vm363_vm8, %v277_v10, 0  ;;  %v325_v1 = vmul.f32 %v323_v2, %v2040_v45  ;;  %v326_v0 = vmul.f32 %v324_v3, %v2043_v46  ;;  %v1738_v2 = vmov 1   ;;  %v2140_v3 = vld [vmem:[#allocation10] sm:$0xff] }
 0x103   :  { %385 = vmatpush1.bf16.msra.mxu0 %v365_v31  ;;  %1561 = vset.pattern.permute.xlu1 %v1738_v2 }
 0x104   :  { %v330_v33 = vpop.permute.xlu1 %329  ;;  %v328_v34 = vpop.permute.xlu0 %327  ;;  %1497 = vmatprep.subr.mxu0 %v1736_v58 }
 0x105   :  { %v331_v39 = vsel %vm229_vm6, %v328_v34, %v330_v33  ;;  %v332_v40 = vsel %vm229_vm6, %v330_v33, %v328_v34 }
 0x106   :  { %v333_v41 = vmul.f32 %v331_v39, %v2047_v47  ;;  %v334_v42 = vmul.f32 %v332_v40, %v2050_v48  ;;  %1466 = vmatmul.mubr.msk.bf16.vlgmr.msra.gmra.mrb[0].mxu0 %vm359_vm9, %v353_v32 }
 0x107   :  { %1499 = vmatprep.mubr.msk.f32.mxu0 %vm1737_vm10, %v1736_v58 }
 0x108   :  { %v338_v43 = vpop.permute.xlu1 %337  ;;  %v336_v44 = vpop.permute.xlu0 %335  ;;  %v350_v49 = vpack.c.bf16 %v334_v42, %v326_v0  ;;  %v349_v50 = vpack.c.bf16 %v333_v41, %v325_v1 }
 0x109   :  { %v339_v51 = vsel %vm251_vm7, %v336_v44, %v338_v43  ;;  %v340_v52 = vsel %vm251_vm7, %v338_v43, %v336_v44 }
 0x10a   :  { %v341_v53 = vmul.f32 %v339_v51, %v2075_v19  ;;  %v342_v54 = vmul.f32 %v340_v52, %v2078_v20  ;;  %423 = vmatprep.subr.bf16.mxu1 %v350_v49 }
 0x10b   :  { %424 = vmatpush1.bf16.msra.mxu1 %v349_v50 }
 0x10c   :  { %v351_v55 = vpack.c.bf16 %v341_v53, %v341_v53  ;;  %v352_v56 = vpack.c.bf16 %v342_v54, %v342_v54 }
 0x10e   :  { %1467 = vmatprep.subr.msk.bf16.mxu1 %vm363_vm8, %v352_v56  ;;  %v371_v57 = vsel %vm363_vm8, %v351_v55, 0 }
 0x10f   :  { %426 = vmatpush1.bf16.msra.mxu1 %v371_v57 }
 0x110   :  { %1502 = vmatprep.subr.mxu1 %v1736_v58 }
 0x112   :  { %1468 = vmatmul.mubr.msk.bf16.vlgmr.msra.gmra.mrb[0].mxu1 %vm359_vm9, %v353_v32 }
 0x113   :  { %1504 = vmatprep.mubr.msk.f32.mxu1 %vm1737_vm10, %v1736_v58 }
 0x119   :  { %v357_v59 = vpop.permute.xlu0 %356 }
 0x1d9   :  { %v410_v62 = vpop.f32.mrb[0].mxu0 }
 0x1da   :  { %v2114_v63 = vadd.f32 %v410_v62, %v357_v59  ;;  %v412_v6 = vpop.f32.mrb[1].mxu0 }
 0x1db   :  { %v2116_v7 = vadd.f32 %v412_v6, %v357_v59  ;;  %v414_v11 = vpop.f32.mrb[2].mxu0  ;;  %v1739_v6 = vmov 2  }
 0x1dc   :  { %v415_v12 = vpop.f32.mrb[3].mxu0  ;;  %v461_v13 = vmul.f32 %v2114_v63, %v2114_v63 }
 0x1dd   :  { %v458_v14 = vadd.f32 %v2116_v7, %v2114_v63  ;;  %v462_v21 = vmul.f32 %v2116_v7, %v2116_v7 }
 0x1df   :  { %459 = vadd.xlane.f32.xlu1 %v458_v14  ;;  %v463_v22 = vadd.f32 %v462_v21, %v461_v13 }
 0x1e1   :  { %464 = vadd.xlane.f32.xlu0 %v463_v22 }
 0x1e5   :  { %v451_v23 = vpop.f32.mrb[0].mxu1 }
 0x1e6   :  { %v2124_v24 = vadd.f32 %v451_v23, %v357_v59  ;;  %v453_v25 = vpop.f32.mrb[1].mxu1 }
 0x1e7   :  { %v2126_v26 = vadd.f32 %v453_v25, %v357_v59  ;;  %v455_v27 = vpop.f32.mrb[2].mxu1 }
 0x1e8   :  { %v647_v9 = vmul.f32 %v2124_v24, %v2124_v24  ;;  %v456_v10 = vpop.f32.mrb[3].mxu1 }
 0x1e9   :  { %v644_v28 = vadd.f32 %v2126_v26, %v2124_v24  ;;  %v648_v29 = vmul.f32 %v2126_v26, %v2126_v26 }
 0x1eb   :  { %645 = vadd.xlane.f32.xlu1 %v644_v28  ;;  %v649_v30 = vadd.f32 %v648_v29, %v647_v9 }
 0x1ed   :  { %650 = vadd.xlane.f32.xlu0 %v649_v30 }
 0x1fc   :  { %631 = vperm.xlu1 %1561, %v1917_v5  }
 0x200   :  { %1562 = vset.pattern.permute.xlu1 %v1734_v4 }
 0x26c   :  { %v460_v31 = vpop.xlane.xlu1 %459 }
 0x26d   :  { %1498 = vmatpush3.msra.mxu0 %v460_v31 }
 0x26e   :  { %v465_v32 = vpop.xlane.xlu0 %464  ;;  %1500 = vmatmul.mubr.msk.f32.vlgmr.msra.gmra.mrb[4].mxu0 %vm466_vm11, %v2140_v3  ;;  %1507 = vmatprep.subr.mxu0 %v1736_v58 }
 0x26f   :  { %1503 = vmatpush3.msra.mxu1 %v465_v32  ;;  %1509 = vmatprep.mubr.msk.f32.mxu0 %vm1737_vm10, %v1736_v58 }
 0x270   :  { %1505 = vmatmul.mubr.msk.f32.vlgmr.msra.gmra.mrb[4].mxu1 %vm466_vm11, %v2140_v3  ;;  %1512 = vmatprep.subr.mxu1 %v1736_v58 }
 0x271   :  { %1514 = vmatprep.mubr.msk.f32.mxu1 %vm1737_vm10, %v1736_v58 }
 0x278   :  { %v646_v1 = vpop.xlane.xlu1 %645 }
 0x279   :  { %1508 = vmatpush3.msra.mxu0 %v646_v1 }
 0x27a   :  { %v651_v0 = vpop.xlane.xlu0 %650  ;;  %1510 = vmatmul.mubr.msk.f32.vlgmr.msra.gmra.mrb[6].mxu0 %vm466_vm11, %v2140_v3 }
 0x27b   :  { %1513 = vmatpush3.msra.mxu1 %v651_v0  ;;  %1018 = vmatprep.mubr.bf16.mxu0 %v1734_v4 }
 0x27c   :  { %1515 = vmatmul.mubr.msk.f32.vlgmr.msra.gmra.mrb[6].mxu1 %vm466_vm11, %v2140_v3  ;;  %v632_v12 = vpop.permute.xlu1 %631 }
 0x27d   :  { %1059 = vmatprep.mubr.bf16.mxu1 %v1734_v4 }
 0x341   :  { %v536_v33 = vpop.f32.mrb[4].mxu0 }
 0x342   :  { %v540_v34 = vmul.f32 0.00048828125, %v536_v33  ;;  %v1501_v39 = vpop.f32.mrb[5].mxu0 }
 0x343   :  { %v607_v40 = vpop.f32.mrb[4].mxu1 }
 0x344   :  { %v612_v41 = vmul.f32 %v540_v34, %v540_v34  ;;  %v611_v42 = vmul.f32 0.00048828125, %v607_v40  ;;  %616 = vperm.xlu1 %1562, %v540_v34   ;;  %v1506_v43 = vpop.f32.mrb[5].mxu1 }
 0x346   :  { %v613_v44 = vsub.f32 %v611_v42, %v612_v41  ;;  %v1740_v41 = vmov 3  }
 0x348   :  { %v621_v49 = vadd.f32 1e-05, %v613_v44 }
 0x34a   :  { %1570 = vrsqrt.f32 %v621_v49 }
 0x34d   :  { %v718_v50 = vpop.f32.mrb[6].mxu0 }
 0x34e   :  { %v722_v51 = vmul.f32 0.00048828125, %v718_v50  ;;  %v1511_v52 = vpop.f32.mrb[7].mxu0 }
 0x34f   :  { %v789_v53 = vpop.f32.mrb[6].mxu1 }
 0x350   :  { %v794_v54 = vmul.f32 %v722_v51, %v722_v51  ;;  %v793_v55 = vmul.f32 0.00048828125, %v789_v53  ;;  %798 = vperm.xlu1 %1562, %v722_v51   ;;  %v1516_v56 = vpop.f32.mrb[7].mxu1 }
 0x352   :  { %v795_v57 = vsub.f32 %v793_v55, %v794_v54 }
 0x354   :  { %v1571_v59 = vpop.eup %1570  ;;  %v803_v62 = vadd.f32 1e-05, %v795_v57 }
 0x355   :  { %625 = vperm.xlu0 %1560, %v1571_v59  }
 0x356   :  { %1572 = vrsqrt.f32 %v803_v62 }
 0x359   :  { %1563 = vset.pattern.permute.xlu0 %v1739_v6 }
 0x35a   :  { %637 = vperm.xlu0 %1563, %v1917_v5  }
 0x35e   :  { %1566 = vset.pattern.permute.xlu0 %v1734_v4 }
 0x360   :  { %v1573_v11 = vpop.eup %1572 }
 0x361   :  { %807 = vperm.xlu1 %1562, %v1573_v11  }
 0x365   :  { %1564 = vset.pattern.permute.xlu1 %v1740_v41 }
 0x3c3   :  { %v617_v13 = vpop.permute.xlu1 %616 }
 0x3c4   :  { %v619_v14 = vsub.f32 %v2114_v63, %v617_v13  ;;  %v620_v21 = vsub.f32 %v2116_v7, %v617_v13 }
 0x3cf   :  { %v799_v63 = vpop.permute.xlu1 %798 }
 0x3d0   :  { %v801_v31 = vsub.f32 %v2124_v24, %v799_v63  ;;  %v802_v32 = vsub.f32 %v2126_v26, %v799_v63 }
 0x3d4   :  { %v626_v22 = vpop.permute.xlu0 %625 }
 0x3d5   :  { %v628_v23 = vmul.f32 %v626_v22, %v619_v14  ;;  %v629_v25 = vmul.f32 %v626_v22, %v620_v21 }
 0x3d7   :  { %v634_v27 = vmul.f32 %v632_v12, %v628_v23  ;;  %v635_v9 = vmul.f32 %v632_v12, %v629_v25 }
 0x3d9   :  { %v638_v10 = vpop.permute.xlu0 %637 }
 0x3da   :  { %v640_v28 = vadd.f32 %v638_v10, %v634_v27  ;;  %v641_v29 = vadd.f32 %v638_v10, %v635_v9 }
 0x3dc   :  { %v2162_v30 = vmax.f32 %v640_v28, 0.0  ;;  %v2164_v2 = vmax.f32 %v641_v29, 0.0 }
 0x3de   :  { %820 = vrot.lane.b32.xlu0 %v2164_v2, %s1728_s7  ;;  %818 = vrot.lane.b32.xlu1 %v2162_v30, %s1728_s7 }
 0x3e0   :  { %v808_v7 = vpop.permute.xlu1 %807 }
 0x3e1   :  { %v810_v1 = vmul.f32 %v808_v7, %v801_v31  ;;  %v811_v0 = vmul.f32 %v808_v7, %v802_v32 }
 0x3e2   :  { %828 = vrot.lane.b32.xlu0 %v2164_v2, %s1725_s24  ;;  %826 = vrot.lane.b32.xlu1 %v2162_v30, %s1725_s24 }
 0x3e3   :  { %v812_v33 = vmul.f32 %v810_v1, %v632_v12  ;;  %v813_v34 = vmul.f32 %v811_v0, %v632_v12 }
 0x3e5   :  { %v814_v24 = vadd.f32 %v812_v33, %v638_v10  ;;  %v815_v26 = vadd.f32 %v813_v34, %v638_v10 }
 0x3e6   :  { %836 = vrot.lane.b32.xlu0 %v2164_v2, %s1729_s4  ;;  %834 = vrot.lane.b32.xlu1 %v2162_v30, %s1729_s4 }
 0x3e7   :  { %v2200_v39 = vmax.f32 %v814_v24, 0.0  ;;  %v2202_v40 = vmax.f32 %v815_v26, 0.0 }
 0x3ea   :  { %844 = vrot.lane.b32.xlu0 %v2164_v2, %s1730_s8  ;;  %842 = vrot.lane.b32.xlu1 %v2162_v30, %s1730_s8 }
 0x3ee   :  { %852 = vrot.lane.b32.xlu0 %v2164_v2, %s1731_s9  ;;  %850 = vrot.lane.b32.xlu1 %v2162_v30, %s1731_s9 }
 0x3f2   :  { %860 = vrot.lane.b32.xlu0 %v2164_v2, %s1732_s10  ;;  %858 = vrot.lane.b32.xlu1 %v2162_v30, %s1732_s10 }
 0x3f6   :  { %868 = vrot.lane.b32.xlu0 %v2164_v2, %s1733_s11  ;;  %866 = vrot.lane.b32.xlu1 %v2162_v30, %s1733_s11 }
 0x3fa   :  { %876 = vrot.lane.b32.xlu0 %v2164_v2, %s1735_s12  ;;  %874 = vrot.lane.b32.xlu1 %v2162_v30, %s1735_s12 }
 0x3fe   :  { %894 = vrot.lane.b32.xlu0 %v2202_v40, %s1728_s7  ;;  %892 = vrot.lane.b32.xlu1 %v2200_v39, %s1728_s7 }
 0x402   :  { %902 = vrot.lane.b32.xlu0 %v2202_v40, %s1725_s24  ;;  %900 = vrot.lane.b32.xlu1 %v2200_v39, %s1725_s24 }
 0x406   :  { %910 = vrot.lane.b32.xlu0 %v2202_v40, %s1729_s4  ;;  %908 = vrot.lane.b32.xlu1 %v2200_v39, %s1729_s4 }
 0x40a   :  { %918 = vrot.lane.b32.xlu0 %v2202_v40, %s1730_s8  ;;  %916 = vrot.lane.b32.xlu1 %v2200_v39, %s1730_s8 }
 0x40e   :  { %926 = vrot.lane.b32.xlu0 %v2202_v40, %s1731_s9  ;;  %924 = vrot.lane.b32.xlu1 %v2200_v39, %s1731_s9 }
 0x412   :  { %934 = vrot.lane.b32.xlu0 %v2202_v40, %s1732_s10  ;;  %932 = vrot.lane.b32.xlu1 %v2200_v39, %s1732_s10 }
 0x416   :  { %942 = vrot.lane.b32.xlu0 %v2202_v40, %s1733_s11  ;;  %940 = vrot.lane.b32.xlu1 %v2200_v39, %s1733_s11 }
 0x41a   :  { %950 = vrot.lane.b32.xlu0 %v2202_v40, %s1735_s12  ;;  %948 = vrot.lane.b32.xlu1 %v2200_v39, %s1735_s12 }
 0x41e   :  { %968 = vperm.xlu1 %1564, %v1917_v5  }
 0x422   :  { %1565 = vset.pattern.permute.xlu1 %v1734_v4 }
 0x450   :  { %v821_v42 = vpop.permute.xlu0 %820  ;;  %v819_v43 = vpop.permute.xlu1 %818 }
 0x451   :  { %v822_v44 = vsel %vm98_vm1, %v819_v43, %v821_v42  ;;  %v823_v49 = vsel %vm98_vm1, %v821_v42, %v819_v43 }
 0x452   :  { %v824_v5 = vmul.f32 %v823_v49, %v1938_v16  ;;  %v825_v54 = vmul.f32 %v822_v44, %v1941_v17 }
 0x454   :  { %v829_v50 = vpop.permute.xlu0 %828  ;;  %v827_v51 = vpop.permute.xlu1 %826 }
 0x455   :  { %v830_v52 = vsel %vm119_vm0, %v827_v51, %v829_v50  ;;  %v831_v53 = vsel %vm119_vm0, %v829_v50, %v827_v51 }
 0x456   :  { %v832_v55 = vmul.f32 %v831_v53, %v1935_v15  ;;  %v833_v56 = vmul.f32 %v830_v52, %v1944_v18 }
 0x458   :  { %v882_v57 = vpack.c.bf16 %v832_v55, %v824_v5  ;;  %v837_v59 = vpop.permute.xlu0 %836  ;;  %v835_v62 = vpop.permute.xlu1 %834  ;;  %v883_v6 = vpack.c.bf16 %v833_v56, %v825_v54 }
 0x459   :  { %v838_v11 = vsel %vm141_vm2, %v835_v62, %v837_v59  ;;  %v839_v12 = vsel %vm141_vm2, %v837_v59, %v835_v62 }
 0x45a   :  { %986 = vmatprep.subr.bf16.mxu0 %v883_v6  ;;  %v840_v23 = vmul.f32 %v839_v12, %v1967_v35  ;;  %v841_v25 = vmul.f32 %v838_v11, %v1970_v36 }
 0x45b   :  { %987 = vmatpush1.bf16.msra.mxu0 %v882_v57 }
 0x45c   :  { %v845_v13 = vpop.permute.xlu0 %844  ;;  %v843_v14 = vpop.permute.xlu1 %842 }
 0x45d   :  { %v846_v21 = vsel %vm163_vm3, %v843_v14, %v845_v13  ;;  %v847_v22 = vsel %vm163_vm3, %v845_v13, %v843_v14 }
 0x45e   :  { %v848_v27 = vmul.f32 %v847_v22, %v1973_v37  ;;  %v849_v9 = vmul.f32 %v846_v21, %v1976_v38  ;;  %v2294_v22 = vld [vmem:[#allocation7] sm:$0xf] }
 0x460   :  { %v884_v10 = vpack.c.bf16 %v848_v27, %v840_v23  ;;  %v853_v28 = vpop.permute.xlu0 %852  ;;  %v851_v29 = vpop.permute.xlu1 %850  ;;  %v885_v63 = vpack.c.bf16 %v849_v9, %v841_v25 }
 0x461   :  { %v854_v7 = vsel %vm185_vm4, %v851_v29, %v853_v28  ;;  %v855_v31 = vsel %vm185_vm4, %v853_v28, %v851_v29 }
 0x462   :  { %v856_v32 = vmul.f32 %v854_v7, %v2003_v60  ;;  %v857_v1 = vmul.f32 %v855_v31, %v2006_v61  ;;  %988 = vmatprep.subr.bf16.mxu0 %v885_v63 }
 0x463   :  { %989 = vmatpush1.bf16.msra.mxu0 %v884_v10 }
 0x464   :  { %v886_v0 = vpack.c.bf16 %v856_v32, %v2162_v30  ;;  %v861_v33 = vpop.permute.xlu0 %860  ;;  %v859_v34 = vpop.permute.xlu1 %858  ;;  %v887_v24 = vpack.c.bf16 %v857_v1, %v2164_v2 }
 0x465   :  { %v862_v26 = vsel %vm207_vm5, %v859_v34, %v861_v33  ;;  %v863_v41 = vsel %vm207_vm5, %v861_v33, %v859_v34 }
 0x466   :  { %990 = vmatprep.subr.bf16.mxu0 %v887_v24  ;;  %v864_v49 = vmul.f32 %v862_v26, %v2040_v45  ;;  %v865_v2 = vmul.f32 %v863_v41, %v2043_v46 }
 0x467   :  { %991 = vmatpush1.bf16.msra.mxu0 %v886_v0 }
 0x468   :  { %v869_v42 = vpop.permute.xlu0 %868  ;;  %v867_v43 = vpop.permute.xlu1 %866 }
 0x469   :  { %v870_v44 = vsel %vm229_vm6, %v867_v43, %v869_v42  ;;  %v871_v30 = vsel %vm229_vm6, %v869_v42, %v867_v43 }
 0x46a   :  { %v872_v50 = vmul.f32 %v870_v44, %v2047_v47  ;;  %v873_v51 = vmul.f32 %v871_v30, %v2050_v48 }
 0x46c   :  { %v888_v52 = vpack.c.bf16 %v872_v50, %v864_v49  ;;  %v877_v53 = vpop.permute.xlu0 %876  ;;  %v875_v5 = vpop.permute.xlu1 %874  ;;  %v889_v54 = vpack.c.bf16 %v873_v51, %v865_v2 }
 0x46d   :  { %v878_v55 = vsel %vm251_vm7, %v875_v5, %v877_v53  ;;  %v879_v56 = vsel %vm251_vm7, %v877_v53, %v875_v5 }
 0x46e   :  { %v880_v57 = vmul.f32 %v878_v55, %v2075_v19  ;;  %v881_v59 = vmul.f32 %v879_v56, %v2078_v20  ;;  %992 = vmatprep.subr.bf16.mxu0 %v889_v54 }
 0x46f   :  { %993 = vmatpush1.bf16.msra.mxu0 %v888_v52 }
 0x470   :  { %v890_v62 = vpack.c.bf16 %v880_v57, %v880_v57  ;;  %v891_v6 = vpack.c.bf16 %v881_v59, %v881_v59  ;;  %v895_v11 = vpop.permute.xlu0 %894  ;;  %v893_v12 = vpop.permute.xlu1 %892 }
 0x471   :  { %v896_v14 = vsel %vm98_vm1, %v893_v12, %v895_v11  ;;  %v897_v21 = vsel %vm98_vm1, %v895_v11, %v893_v12 }
 0x472   :  { %1473 = vmatprep.subr.msk.bf16.mxu0 %vm363_vm8, %v891_v6  ;;  %v975_v13 = vsel %vm363_vm8, %v890_v62, 0  ;;  %v898_v10 = vmul.f32 %v897_v21, %v1938_v16  ;;  %v899_v28 = vmul.f32 %v896_v14, %v1941_v17 }
 0x473   :  { %995 = vmatpush1.bf16.msra.mxu0 %v975_v13 }
 0x474   :  { %v903_v23 = vpop.permute.xlu0 %902  ;;  %v901_v25 = vpop.permute.xlu1 %900  ;;  %1517 = vmatprep.subr.mxu0 %v1736_v58 }
 0x475   :  { %v904_v27 = vsel %vm119_vm0, %v901_v25, %v903_v23  ;;  %v905_v9 = vsel %vm119_vm0, %v903_v23, %v901_v25 }
 0x476   :  { %v906_v29 = vmul.f32 %v905_v9, %v1935_v15  ;;  %v907_v63 = vmul.f32 %v904_v27, %v1944_v18  ;;  %1474 = vmatmul.mubr.msk.bf16.vlgmr.msra.gmra.mrb[8].mxu0 %vm359_vm9, %v2294_v22 }
 0x477   :  { %1519 = vmatprep.mubr.msk.f32.mxu0 %vm1737_vm10, %v1736_v58 }
 0x478   :  { %v956_v7 = vpack.c.bf16 %v906_v29, %v898_v10  ;;  %v911_v31 = vpop.permute.xlu0 %910  ;;  %v909_v32 = vpop.permute.xlu1 %908  ;;  %v957_v1 = vpack.c.bf16 %v907_v63, %v899_v28 }
 0x479   :  { %v912_v16 = vsel %vm141_vm2, %v909_v32, %v911_v31  ;;  %v913_v17 = vsel %vm141_vm2, %v911_v31, %v909_v32 }
 0x47a   :  { %1027 = vmatprep.subr.bf16.mxu1 %v957_v1  ;;  %v914_v34 = vmul.f32 %v913_v17, %v1967_v35  ;;  %v915_v24 = vmul.f32 %v912_v16, %v1970_v36 }
 0x47b   :  { %1028 = vmatpush1.bf16.msra.mxu1 %v956_v7 }
 0x47c   :  { %v919_v15 = vpop.permute.xlu0 %918  ;;  %v917_v18 = vpop.permute.xlu1 %916 }
 0x47d   :  { %v920_v0 = vsel %vm163_vm3, %v917_v18, %v919_v15  ;;  %v921_v33 = vsel %vm163_vm3, %v919_v15, %v917_v18 }
 0x47e   :  { %v922_v26 = vmul.f32 %v921_v33, %v1973_v37  ;;  %v923_v41 = vmul.f32 %v920_v0, %v1976_v38 }
 0x480   :  { %v958_v42 = vpack.c.bf16 %v922_v26, %v914_v34  ;;  %v927_v43 = vpop.permute.xlu0 %926  ;;  %v925_v44 = vpop.permute.xlu1 %924  ;;  %v959_v30 = vpack.c.bf16 %v923_v41, %v915_v24 }
 0x481   :  { %v928_v49 = vsel %vm185_vm4, %v925_v44, %v927_v43  ;;  %v929_v2 = vsel %vm185_vm4, %v927_v43, %v925_v44 }
 0x482   :  { %v930_v50 = vmul.f32 %v928_v49, %v2003_v60  ;;  %v931_v35 = vmul.f32 %v929_v2, %v2006_v61  ;;  %1029 = vmatprep.subr.bf16.mxu1 %v959_v30 }
 0x483   :  { %1030 = vmatpush1.bf16.msra.mxu1 %v958_v42 }
 0x484   :  { %v960_v36 = vpack.c.bf16 %v930_v50, %v2200_v39  ;;  %v935_v37 = vpop.permute.xlu0 %934  ;;  %v933_v38 = vpop.permute.xlu1 %932  ;;  %v961_v51 = vpack.c.bf16 %v931_v35, %v2202_v40 }
 0x485   :  { %v936_v52 = vsel %vm207_vm5, %v933_v38, %v935_v37  ;;  %v937_v53 = vsel %vm207_vm5, %v935_v37, %v933_v38 }
 0x486   :  { %1031 = vmatprep.subr.bf16.mxu1 %v961_v51  ;;  %v938_v54 = vmul.f32 %v936_v52, %v2040_v45  ;;  %v939_v40 = vmul.f32 %v937_v53, %v2043_v46  ;;  %v1741_v53 = vmov 4  }
 0x487   :  { %1032 = vmatpush1.bf16.msra.mxu1 %v960_v36 }
 0x488   :  { %v943_v5 = vpop.permute.xlu0 %942  ;;  %v941_v60 = vpop.permute.xlu1 %940 }
 0x489   :  { %v944_v61 = vsel %vm229_vm6, %v941_v60, %v943_v5  ;;  %v945_v39 = vsel %vm229_vm6, %v943_v5, %v941_v60  ;;  %v1578_v5 = vld [vmem:[#allocation8] sm:$0xff] }
 0x48a   :  { %v946_v55 = vmul.f32 %v944_v61, %v2047_v47  ;;  %v947_v56 = vmul.f32 %v945_v39, %v2050_v48  ;;  %v1742_v39 = vmov 5  }
 0x48c   :  { %v962_v57 = vpack.c.bf16 %v946_v55, %v938_v54  ;;  %v951_v59 = vpop.permute.xlu0 %950  ;;  %v949_v62 = vpop.permute.xlu1 %948  ;;  %v963_v6 = vpack.c.bf16 %v947_v56, %v939_v40 }
 0x48d   :  { %v952_v11 = vsel %vm251_vm7, %v949_v62, %v951_v59  ;;  %v953_v12 = vsel %vm251_vm7, %v951_v59, %v949_v62 }
 0x48e   :  { %v954_v13 = vmul.f32 %v952_v11, %v2075_v19  ;;  %v955_v45 = vmul.f32 %v953_v12, %v2078_v20  ;;  %1033 = vmatprep.subr.bf16.mxu1 %v963_v6 }
 0x48f   :  { %1034 = vmatpush1.bf16.msra.mxu1 %v962_v57 }
 0x490   :  { %v964_v46 = vpack.c.bf16 %v954_v13, %v954_v13  ;;  %v965_v47 = vpack.c.bf16 %v955_v45, %v955_v45 }
 0x492   :  { %1475 = vmatprep.subr.msk.bf16.mxu1 %vm363_vm8, %v965_v47  ;;  %v981_v48 = vsel %vm363_vm8, %v964_v46, 0 }
 0x493   :  { %1036 = vmatpush1.bf16.msra.mxu1 %v981_v48 }
 0x494   :  { %1522 = vmatprep.subr.mxu1 %v1736_v58 }
 0x496   :  { %1476 = vmatmul.mubr.msk.bf16.vlgmr.msra.gmra.mrb[8].mxu1 %vm359_vm9, %v2294_v22 }
 0x497   :  { %1524 = vmatprep.mubr.msk.f32.mxu1 %vm1737_vm10, %v1736_v58 }
 0x49d   :  { %v969_v8 = vpop.permute.xlu1 %968 }
 0x549   :  { %v1020_v19 = vpop.f32.mrb[8].mxu0 }
 0x54a   :  { %v2354_v20 = vadd.f32 %v1020_v19, %v969_v8  ;;  %v1022_v14 = vpop.f32.mrb[9].mxu0 }
 0x54b   :  { %v2356_v21 = vadd.f32 %v1022_v14, %v969_v8  ;;  %v1024_v23 = vpop.f32.mrb[10].mxu0 }
 0x54c   :  { %v1071_v25 = vmul.f32 %v2354_v20, %v2354_v20  ;;  %v1025_v27 = vpop.f32.mrb[11].mxu0 }
 0x54d   :  { %v1068_v9 = vadd.f32 %v2356_v21, %v2354_v20  ;;  %v1072_v22 = vmul.f32 %v2356_v21, %v2356_v21 }
 0x54f   :  { %1069 = vadd.xlane.f32.xlu0 %v1068_v9  ;;  %v1073_v10 = vadd.f32 %v1072_v22, %v1071_v25  ;;  %v1430_v9 = vld [vmem:[#allocation2 + $0x10] sm:$0xff]  ;;  %v1431_v22 = vld [vmem:[#allocation2 + $0x18] sm:$0xff] }
 0x551   :  { %1074 = vadd.xlane.f32.xlu1 %v1073_v10 }
 0x569   :  { %v1061_v28 = vpop.f32.mrb[8].mxu1 }
 0x56a   :  { %v2364_v29 = vadd.f32 %v1061_v28, %v969_v8  ;;  %v1063_v63 = vpop.f32.mrb[9].mxu1 }
 0x56b   :  { %v2366_v7 = vadd.f32 %v1063_v63, %v969_v8  ;;  %v1065_v31 = vpop.f32.mrb[10].mxu1 }
 0x56c   :  { %v1066_v32 = vpop.f32.mrb[11].mxu1  ;;  %v1259_v16 = vmul.f32 %v2364_v29, %v2364_v29 }
 0x56d   :  { %v1256_v1 = vadd.f32 %v2366_v7, %v2364_v29  ;;  %v1260_v17 = vmul.f32 %v2366_v7, %v2366_v7 }
 0x56f   :  { %1257 = vadd.xlane.f32.xlu0 %v1256_v1  ;;  %v1261_v15 = vadd.f32 %v1260_v17, %v1259_v16 }
 0x573   :  { %1262 = vadd.xlane.f32.xlu0 %v1261_v15 }
 0x5dc   :  { %v1070_v18 = vpop.xlane.xlu0 %1069 }
 0x5dd   :  { %1518 = vmatpush3.msra.mxu0 %v1070_v18 }
 0x5de   :  { %v1075_v0 = vpop.xlane.xlu1 %1074  ;;  %1520 = vmatmul.mubr.msk.f32.vlgmr.msra.gmra.mrb[12].mxu0 %vm466_vm11, %v2140_v3  ;;  %1527 = vmatprep.subr.mxu0 %v1736_v58 }
 0x5df   :  { %1523 = vmatpush3.msra.mxu1 %v1075_v0  ;;  %1529 = vmatprep.mubr.msk.f32.mxu0 %vm1737_vm10, %v1736_v58 }
 0x5e0   :  { %1525 = vmatmul.mubr.msk.f32.vlgmr.msra.gmra.mrb[12].mxu1 %vm466_vm11, %v2140_v3  ;;  %1532 = vmatprep.subr.mxu1 %v1736_v58 }
 0x5e1   :  { %1534 = vmatprep.mubr.msk.f32.mxu1 %vm1737_vm10, %v1736_v58 }
 0x5fc   :  { %v1258_v33 = vpop.xlane.xlu0 %1257 }
 0x5fd   :  { %1528 = vmatpush3.msra.mxu0 %v1258_v33 }
 0x5fe   :  { %1530 = vmatmul.mubr.msk.f32.vlgmr.msra.gmra.mrb[14].mxu0 %vm466_vm11, %v2140_v3 }
 0x600   :  { %v1263_v34 = vpop.xlane.xlu0 %1262 }
 0x601   :  { %1533 = vmatpush3.msra.mxu1 %v1263_v34 }
 0x602   :  { %1535 = vmatmul.mubr.msk.f32.vlgmr.msra.gmra.mrb[14].mxu1 %vm466_vm11, %v2140_v3 }
 0x6b1   :  { %v1142_v24 = vpop.f32.mrb[12].mxu0 }
 0x6b2   :  { %v1146_v26 = vmul.f32 0.00048828125, %v1142_v24  ;;  %v1521_v41 = vpop.f32.mrb[13].mxu0 }
 0x6b3   :  { %v1213_v42 = vpop.f32.mrb[12].mxu1 }
 0x6b4   :  { %v1218_v43 = vmul.f32 %v1146_v26, %v1146_v26  ;;  %v1217_v44 = vmul.f32 0.00048828125, %v1213_v42  ;;  %1222 = vperm.xlu1 %1565, %v1146_v26   ;;  %v1526_v30 = vpop.f32.mrb[13].mxu1 }
 0x6b6   :  { %v1219_v49 = vsub.f32 %v1217_v44, %v1218_v43 }
 0x6b8   :  { %v1227_v58 = vadd.f32 1e-05, %v1219_v49 }
 0x6ba   :  { %1574 = vrsqrt.f32 %v1227_v58 }
 0x6c4   :  { %v1575_v2 = vpop.eup %1574 }
 0x6c5   :  { %1231 = vperm.xlu0 %1566, %v1575_v2  }
 0x6d1   :  { %v1330_v50 = vpop.f32.mrb[14].mxu0 }
 0x6d2   :  { %v1334_v35 = vmul.f32 0.00048828125, %v1330_v50  ;;  %v1531_v36 = vpop.f32.mrb[15].mxu0 }
 0x6d4   :  { %v1406_v37 = vmul.f32 %v1334_v35, %v1334_v35  ;;  %1410 = vperm.xlu1 %1565, %v1334_v35  }
 0x6d5   :  { %v1401_v38 = vpop.f32.mrb[14].mxu1 }
 0x6d6   :  { %v1405_v3 = vmul.f32 0.00048828125, %v1401_v38  ;;  %v1536_v51 = vpop.f32.mrb[15].mxu1 }
 0x6d8   :  { %v1407_v52 = vsub.f32 %v1405_v3, %v1406_v37  ;;  %1567 = vset.pattern.permute.xlu1 %v1741_v53 }
 0x6d9   :  { %1237 = vperm.xlu1 %1567, %v1578_v5  }
 0x6da   :  { %v1415_v60 = vadd.f32 1e-05, %v1407_v52 }
 0x6dc   :  { %1576 = vrsqrt.f32 %v1415_v60 }
 0x6dd   :  { %1568 = vset.pattern.permute.xlu1 %v1734_v4 }
 0x6e6   :  { %v1577_v61 = vpop.eup %1576 }
 0x6e7   :  { %1419 = vperm.xlu1 %1568, %v1577_v61  }
 0x6eb   :  { %1569 = vset.pattern.permute.xlu1 %v1742_v39 }
 0x6ec   :  { %1243 = vperm.xlu1 %1569, %v1578_v5  }
 0x733   :  { %v1223_v54 = vpop.permute.xlu1 %1222 }
 0x734   :  { %v1225_v62 = vsub.f32 %v2354_v20, %v1223_v54  ;;  %v1226_v6 = vsub.f32 %v2356_v21, %v1223_v54 }
 0x744   :  { %v1232_v56 = vpop.permute.xlu0 %1231 }
 0x745   :  { %v1234_v13 = vmul.f32 %v1232_v56, %v1225_v62  ;;  %v1235_v45 = vmul.f32 %v1232_v56, %v1226_v6 }
 0x753   :  { %v1411_v40 = vpop.permute.xlu1 %1410 }
 0x754   :  { %v1413_v57 = vsub.f32 %v2364_v29, %v1411_v40  ;;  %v1414_v59 = vsub.f32 %v2366_v7, %v1411_v40  ;;  %v1579_v29 = vld [vmem:[#allocation2] sm:$0xff]  ;;  %v1580_v7 = vld [vmem:[#allocation2 + $0x8] sm:$0xff] }
 0x758   :  { %v1238_v55 = vpop.permute.xlu1 %1237 }
 0x759   :  { %v1240_v48 = vmul.f32 %v1238_v55, %v1234_v13  ;;  %v1241_v8 = vmul.f32 %v1238_v55, %v1235_v45 }
 0x766   :  { %v1420_v11 = vpop.permute.xlu1 %1419 }
 0x767   :  { %v1422_v12 = vmul.f32 %v1420_v11, %v1413_v57  ;;  %v1423_v4 = vmul.f32 %v1420_v11, %v1414_v59 }
 0x769   :  { %v1424_v46 = vmul.f32 %v1422_v12, %v1238_v55  ;;  %v1425_v47 = vmul.f32 %v1423_v4, %v1238_v55 }
 0x76b   :  { %v1244_v19 = vpop.permute.xlu1 %1243 }
 0x76c   :  { %v1246_v14 = vadd.f32 %v1244_v19, %v1240_v48  ;;  %v1247_v23 = vadd.f32 %v1244_v19, %v1241_v8  ;;  %v1426_v25 = vadd.f32 %v1424_v46, %v1244_v19  ;;  %v1427_v27 = vadd.f32 %v1425_v47, %v1244_v19 }
 0x76e   :  { %v1248_v10 = vmax.f32 %v1246_v14, 0.0  ;;  %v1249_v20 = vmax.f32 %v1247_v23, 0.0  ;;  %v1428_v28 = vmax.f32 %v1426_v25, 0.0  ;;  %v1429_v21 = vmax.f32 %v1427_v27, 0.0 }
 0x770   :  { %v1250_v63 = vadd.f32 %v1579_v29, %v1248_v10  ;;  %v1251_v31 = vadd.f32 %v1580_v7, %v1249_v20  ;;  %v1432_v32 = vadd.f32 %v1430_v9, %v1428_v28  ;;  %v1433_v1 = vadd.f32 %v1431_v22, %v1429_v21 }
 0x772   :  { %v1252_v16 = vmax.f32 %v1250_v63, 0.0  ;;  %v1253_v17 = vmax.f32 %v1251_v31, 0.0  ;;  %v1434_v15 = vmax.f32 %v1432_v32, 0.0  ;;  %v1435_v18 = vmax.f32 %v1433_v1, 0.0 }
 0x774   :  { %1254 = vst [vmem:[#allocation11] sm:$0xff] %v1252_v16  ;;  %1255 = vst [vmem:[#allocation11 + $0x8] sm:$0xff] %v1253_v17 }
 0x775   :  { %1437 = vst [vmem:[#allocation11 + $0x10] sm:$0xff] %v1434_v15  ;;  %1438 = vst [vmem:[#allocation11 + $0x18] sm:$0xff] %v1435_v18 }
 0x776   :  { %1702 = shalt.err (!%p1699_p2)
}
 0x777   :  { %s1703_s7 = scalar_lea.hbm %s2414_s6, 512 }
 0x778   :  { %p1704_p3 = scmp.ne.s32.totalorder %s2414_s6, %s1703_s7  ;;  %p1707_p4 = scmp.lt.u32.totalorder %s1703_s7, %s2414_s6 }
 0x77a   :  { %p1709_p5 = pnand %p1707_p4, %p1704_p3 }
 0x77c   :  { %1712 = shalt.err (!%p1709_p5)
}
 0x77d   :  { %1450 = dma.vmem_to_hbm [thread:$0]  %s1445_s28, 512, %s2414_s6, [#allocation4], %s1724_s3, %s1724_s3, %s1725_s24  }
 0x77e   :  { %1719 = dma.done.wait [#allocation4], 512  }
 0x77f   :  { %1720 = vsyncadd [#allocation4], 4294966784 }
 0x780   :  { %1454 = vsyncpa [#allocation3], 1 }
 0x781   :  { %1455 = vsyncpa [#allocation6], 1 }
 0x782   :  { %1456 = vsyncpa [#allocation9], 1 }
 0x783   :  { %1457 = vsyncpa [#allocation4], 1 }

</bundles_post_ra>
